<compile_context>
chip_gen: v5e
topology: v5e:2x2
jax: 0.10.0
libtpu: 0.0.40
codegen_flags: <defaults>
</compile_context>

<pallas_src>
import math

import jax
import jax.numpy as jnp
from jax.experimental import pallas as pl
from jax.experimental.pallas import tpu as pltpu


LANE = 128  # TPU lane width: last-dim multiples of 128 give lane-dense stores
_MIB = 1024 * 1024


def _round_up(x, m):
    return ((x + m - 1) // m) * m


def _pad_to(a, shape):
    pads = [(0, t - s) for s, t in zip(a.shape, shape)]
    if all(p == (0, 0) for p in pads):
        return a
    return jnp.pad(a, pads)


# --------------------------------------------------------------------------
# Kernel: fused 4-layer MLP, bf16 MXU operands, f32 accumulation, all in VMEM.
# --------------------------------------------------------------------------
def mlp_kernel(x_ref,
               w1_ref, b1_ref,
               w2_ref, b2_ref,
               w3_ref, b3_ref,
               w4_ref, b4_ref,
               o_ref):
    # In-kernel cast: x stays f32 in HBM (single read), bf16 feeds the MXU.
    x = x_ref[...].astype(jnp.bfloat16)

    h = jnp.dot(x, w1_ref[...],
                preferred_element_type=jnp.float32) + b1_ref[...]
    h = jnp.maximum(h, 0.0).astype(jnp.bfloat16)

    h = jnp.dot(h, w2_ref[...],
                preferred_element_type=jnp.float32) + b2_ref[...]
    h = jnp.maximum(h, 0.0).astype(jnp.bfloat16)

    h = jnp.dot(h, w3_ref[...],
                preferred_element_type=jnp.float32) + b3_ref[...]
    h = jnp.maximum(h, 0.0).astype(jnp.bfloat16)

    out = jnp.dot(h, w4_ref[...],
                  preferred_element_type=jnp.float32) + b4_ref[...]
    o_ref[...] = out.astype(o_ref.dtype)


# --------------------------------------------------------------------------
# One-time parameter preparation (pad + bf16 cast). Call once, reuse forever.
# --------------------------------------------------------------------------
def prepare_params(params):
    in_dim, hidden = params["w1"].shape
    out_dim = params["w4"].shape[1]
    in_p = _round_up(in_dim, LANE)
    h_p = _round_up(hidden, LANE)
    out_p = _round_up(out_dim, LANE)
    prepared = {
        "w1": _pad_to(params["w1"], (in_p, h_p)).astype(jnp.bfloat16),
        "w2": _pad_to(params["w2"], (h_p, h_p)).astype(jnp.bfloat16),
        "w3": _pad_to(params["w3"], (h_p, h_p)).astype(jnp.bfloat16),
        "w4": _pad_to(params["w4"], (h_p, out_p)).astype(jnp.bfloat16),
        "b1": _pad_to(params["b1"], (1, h_p)).astype(jnp.float32),
        "b2": _pad_to(params["b2"], (1, h_p)).astype(jnp.float32),
        "b3": _pad_to(params["b3"], (1, h_p)).astype(jnp.float32),
        "b4": _pad_to(params["b4"], (1, out_p)).astype(jnp.float32),
        "dims": (in_dim, hidden, out_dim),
    }
    return prepared


def _vmem_limit_bytes():
    """Physical-VMEM-aware scoped limit with headroom for compiler scratch."""
    try:
        phys = int(pltpu.get_tpu_info().vmem_capacity_bytes)
    except Exception:
        phys = 64 * _MIB  # assume the smallest (v7x per-TC) if query fails
    # Leave ~8 MiB for compiler scratch / semaphores; never ask for >112 MiB.
    return max(32 * _MIB, min(phys - 8 * _MIB, 112 * _MIB))


def _choose_block_batch(B, in_p, out_p, x_itemsize, out_itemsize,
                        weight_bytes, vmem_limit):
    """Largest 16-multiple batch tile (<=256) whose footprint fits VMEM,
    preferring an exact divisor of B so no padded rows / trailing copy."""
    margin = 8 * _MIB  # f32 epilogue temp etc.

    def fits(bb):
        tiles = 2 * bb * (in_p * x_itemsize + out_p * out_itemsize)  # 2x buffered
        return weight_bytes + tiles + margin <= vmem_limit

    bb_max = 16
    for cand in range(256, 15, -16):
        if fits(cand):
            bb_max = cand
            break
    if B <= bb_max:
        return max(16, _round_up(B, 16))  # single tile: read weights once
    for cand in range(bb_max, 15, -16):   # prefer exact divisor of B
        if B % cand == 0:
            return cand
    return bb_max


def _resident_spec(shape, single_buffer):
    """Whole-array block, same index at every grid step -> VMEM-resident.
    Single-buffered when supported: the block index never changes, so the
    second pipeline buffer would be pure VMEM waste."""
    idx = lambda i: (0, 0)
    if single_buffer and hasattr(pl, "Buffered"):
        try:
            return pl.BlockSpec(shape, idx, pipeline_mode=pl.Buffered(1))
        except TypeError:
            pass
    return pl.BlockSpec(shape, idx)


def _run_pipeline(xp, prepared, *, block_batch, in_p, h_p, out_p, out_dtype,
                  semantics, vmem_limit, cost, single_buffer):
    B_pad = xp.shape[0]
    grid = (B_pad // block_batch,)
    return pl.pallas_call(
        mlp_kernel,
        out_shape=jax.ShapeDtypeStruct((B_pad, out_p), out_dtype),
        grid_spec=pltpu.PrefetchScalarGridSpec(
            num_scalar_prefetch=0,
            grid=grid,
            in_specs=[
                pl.BlockSpec((block_batch, in_p), lambda i: (i, 0)),
                _resident_spec((in_p, h_p), single_buffer),
                _resident_spec((1, h_p), single_buffer),
                _resident_spec((h_p, h_p), single_buffer),
                _resident_spec((1, h_p), single_buffer),
                _resident_spec((h_p, h_p), single_buffer),
                _resident_spec((1, h_p), single_buffer),
                _resident_spec((h_p, out_p), single_buffer),
                _resident_spec((1, out_p), single_buffer),
            ],
            out_specs=pl.BlockSpec((block_batch, out_p), lambda i: (i, 0)),
        ),
        compiler_params=pltpu.CompilerParams(
            dimension_semantics=semantics,
            vmem_limit_bytes=vmem_limit,
        ),
        cost_estimate=cost,
    )(xp, prepared["w1"], prepared["b1"], prepared["w2"], prepared["b2"],
      prepared["w3"], prepared["b3"], prepared["w4"], prepared["b4"])


# --------------------------------------------------------------------------
# Forward pass. `prepared` must come from prepare_params() (called once).
# --------------------------------------------------------------------------
def expert_decoder_forward(x, prepared, *, block_batch=None,
                           out_dtype=jnp.float32):
    in_dim, hidden, out_dim = prepared["dims"]
    in_p, h_p = prepared["w1"].shape
    out_p = prepared["w4"].shape[1]
    B = x.shape[0]
    assert x.shape[1] == in_dim

    vmem_limit = _vmem_limit_bytes()
    weight_bytes = sum(int(prepared[k].size) * prepared[k].dtype.itemsize
                       for k in ("w1", "w2", "w3", "w4",
                                 "b1", "b2", "b3", "b4"))

    if block_batch is None:
        block_batch = _choose_block_batch(
            B, in_p, out_p, x.dtype.itemsize, jnp.dtype(out_dtype).itemsize,
            weight_bytes, vmem_limit)
    block_batch = _round_up(block_batch, 16)
    B_pad = _round_up(B, block_batch)
    num_tiles = B_pad // block_batch

    # Only megacore-shard when each v7x core gets >=2 tiles; otherwise a
    # single core streams all tiles and the resident weights are read once.
    semantics = ("parallel",) if num_tiles >= 4 else ("arbitrary",)

    # Activations: pad only if needed (no-op at 128-aligned sizes), keep f32 —
    # the bf16 cast happens inside the kernel under the tile DMA.
    xp = _pad_to(x, (B_pad, in_p))

    flops = 2 * B_pad * (in_p * h_p + 2 * h_p * h_p + h_p * out_p)
    bytes_accessed = (
        xp.size * xp.dtype.itemsize
        + weight_bytes
        + B_pad * out_p * jnp.dtype(out_dtype).itemsize
    )
    cost = pl.CostEstimate(flops=flops, transcendentals=0,
                           bytes_accessed=bytes_accessed)

    kwargs = dict(block_batch=block_batch, in_p=in_p, h_p=h_p, out_p=out_p,
                  out_dtype=out_dtype, semantics=semantics,
                  vmem_limit=vmem_limit, cost=cost)
    try:
        out = _run_pipeline(xp, prepared, single_buffer=True, **kwargs)
    except Exception:
        # pipeline_mode=pl.Buffered(1) not supported by this jax/Mosaic build;
        # fall back to default double-buffered resident weights.
        out = _run_pipeline(xp, prepared, single_buffer=False, **kwargs)

    if B_pad != B or out_p != out_dim:
        out = out[:B, :out_dim]
    return out


# --------------------------------------------------------------------------
# Init + reference.
# --------------------------------------------------------------------------
def init_params(key, input_size, hidden_size, output_size):
    """Deterministic init mimicking nn.Linear's U(-1/sqrt(fan_in), 1/sqrt(fan_in))."""
    dims = [(input_size, hidden_size),
            (hidden_size, hidden_size),
            (hidden_size, hidden_size),
            (hidden_size, output_size)]
    params = {}
    for idx, (fan_in, fan_out) in enumerate(dims, start=1):
        key, kw, kb = jax.random.split(key, 3)
        bound = 1.0 / math.sqrt(fan_in)
        params[f"w{idx}"] = jax.random.uniform(
            kw, (fan_in, fan_out), jnp.float32, -bound, bound)
        params[f"b{idx}"] = jax.random.uniform(
            kb, (1, fan_out), jnp.float32, -bound, bound)
    return params


def reference_forward(x, params):
    """Pure-JAX reference mirroring the kernel's bf16-operand / f32-accumulate math."""
    w = {k: params[k].astype(jnp.bfloat16) for k in ("w1", "w2", "w3", "w4")}
    h = jnp.dot(x.astype(jnp.bfloat16), w["w1"],
                preferred_element_type=jnp.float32) + params["b1"]
    h = jnp.maximum(h, 0.0).astype(jnp.bfloat16)
    h = jnp.dot(h, w["w2"], preferred_element_type=jnp.float32) + params["b2"]
    h = jnp.maximum(h, 0.0).astype(jnp.bfloat16)
    h = jnp.dot(h, w["w3"], preferred_element_type=jnp.float32) + params["b3"]
    h = jnp.maximum(h, 0.0).astype(jnp.bfloat16)
    return jnp.dot(h, w["w4"], preferred_element_type=jnp.float32) + params["b4"]


if __name__ == "__main__":
    # Small stand-in shapes for the flat-vector MLP (real input_size is 32*32*16).
    batch = 64
    input_size = 256
    hidden_size = 128
    output_size = input_size

    key = jax.random.PRNGKey(0)
    key, kx = jax.random.split(key)
    x = jax.random.normal(kx, (batch, input_size), dtype=jnp.float32)

    params = init_params(key, input_size, hidden_size, output_size)
    prepared = prepare_params(params)   # one-time pad + bf16 cast

    out = expert_decoder_forward(x, prepared)
    out = jax.block_until_ready(out)

    ref = reference_forward(x, params)
    assert out.shape == (batch, output_size)
    max_err = float(jnp.max(jnp.abs(out - ref)))
    assert max_err < 5e-2, f"mismatch vs reference: max abs err {max_err}"

    print("KERNEL_OK")
</pallas_src>

<mosaic_0001>
module attributes {stable_mosaic.version = 11 : i64} {
  func.func @mlp_kernel(%arg0: i32, %arg1: memref<64x256xf32, #tpu.memory_space<vmem>>, %arg2: memref<256x128xbf16, #tpu.memory_space<vmem>>, %arg3: memref<1x128xf32, #tpu.memory_space<vmem>>, %arg4: memref<128x128xbf16, #tpu.memory_space<vmem>>, %arg5: memref<1x128xf32, #tpu.memory_space<vmem>>, %arg6: memref<128x128xbf16, #tpu.memory_space<vmem>>, %arg7: memref<1x128xf32, #tpu.memory_space<vmem>>, %arg8: memref<128x256xbf16, #tpu.memory_space<vmem>>, %arg9: memref<1x256xf32, #tpu.memory_space<vmem>>, %arg10: memref<64x256xf32, #tpu.memory_space<vmem>>) attributes {dimension_semantics = [#tpu.dimension_semantics<arbitrary>], iteration_bounds = array<i64: 1>, scalar_prefetch = 0 : i64, scratch_operands = 0 : i64, tpu.core_type = #tpu.core_type<tc>, window_params = [{transform_indices = @transform_0, window_bounds = array<i64: 64, 256>}, {pipeline_mode = #tpu.pipeline_mode<synchronous>, transform_indices = @transform_1, window_bounds = array<i64: 256, 128>}, {pipeline_mode = #tpu.pipeline_mode<synchronous>, transform_indices = @transform_2, window_bounds = array<i64: 1, 128>}, {pipeline_mode = #tpu.pipeline_mode<synchronous>, transform_indices = @transform_3, window_bounds = array<i64: 128, 128>}, {pipeline_mode = #tpu.pipeline_mode<synchronous>, transform_indices = @transform_4, window_bounds = array<i64: 1, 128>}, {pipeline_mode = #tpu.pipeline_mode<synchronous>, transform_indices = @transform_5, window_bounds = array<i64: 128, 128>}, {pipeline_mode = #tpu.pipeline_mode<synchronous>, transform_indices = @transform_6, window_bounds = array<i64: 1, 128>}, {pipeline_mode = #tpu.pipeline_mode<synchronous>, transform_indices = @transform_7, window_bounds = array<i64: 128, 256>}, {pipeline_mode = #tpu.pipeline_mode<synchronous>, transform_indices = @transform_8, window_bounds = array<i64: 1, 256>}, {transform_indices = @transform_9, window_bounds = array<i64: 64, 256>}]} {
    %c0 = arith.constant 0 : index
    %c0_0 = arith.constant 0 : index
    %0 = vector.load %arg1[%c0, %c0_0] : memref<64x256xf32, #tpu.memory_space<vmem>>, vector<64x256xf32>
    %1 = arith.truncf %0 : vector<64x256xf32> to vector<64x256xbf16>
    %c0_1 = arith.constant 0 : index
    %c0_2 = arith.constant 0 : index
    %2 = vector.load %arg2[%c0_1, %c0_2] : memref<256x128xbf16, #tpu.memory_space<vmem>>, vector<256x128xbf16>
    %cst = arith.constant dense<0.000000e+00> : vector<64x128xf32>
    %3 = tpu.matmul %1, %2, %cst {dimension_numbers = #tpu.dot_dimension_numbers<[1], [0], [0], [1], [0, 0, 1, 1], [], []>} : vector<64x256xbf16>, vector<256x128xbf16>, vector<64x128xf32> -> vector<64x128xf32>
    %c0_3 = arith.constant 0 : index
    %c0_4 = arith.constant 0 : index
    %4 = vector.load %arg3[%c0_3, %c0_4] : memref<1x128xf32, #tpu.memory_space<vmem>>, vector<1x128xf32>
    %5 = vector.broadcast %4 : vector<1x128xf32> to vector<64x128xf32>
    %6 = arith.addf %3, %5 : vector<64x128xf32>
    %cst_5 = arith.constant 0.000000e+00 : f32
    %7 = vector.broadcast %cst_5 : f32 to vector<64x128xf32>
    %8 = arith.maximumf %6, %7 : vector<64x128xf32>
    %9 = arith.truncf %8 : vector<64x128xf32> to vector<64x128xbf16>
    %c0_6 = arith.constant 0 : index
    %c0_7 = arith.constant 0 : index
    %10 = vector.load %arg4[%c0_6, %c0_7] : memref<128x128xbf16, #tpu.memory_space<vmem>>, vector<128x128xbf16>
    %cst_8 = arith.constant dense<0.000000e+00> : vector<64x128xf32>
    %11 = tpu.matmul %9, %10, %cst_8 {dimension_numbers = #tpu.dot_dimension_numbers<[1], [0], [0], [1], [0, 0, 1, 1], [], []>} : vector<64x128xbf16>, vector<128x128xbf16>, vector<64x128xf32> -> vector<64x128xf32>
    %c0_9 = arith.constant 0 : index
    %c0_10 = arith.constant 0 : index
    %12 = vector.load %arg5[%c0_9, %c0_10] : memref<1x128xf32, #tpu.memory_space<vmem>>, vector<1x128xf32>
    %13 = vector.broadcast %12 : vector<1x128xf32> to vector<64x128xf32>
    %14 = arith.addf %11, %13 : vector<64x128xf32>
    %cst_11 = arith.constant 0.000000e+00 : f32
    %15 = vector.broadcast %cst_11 : f32 to vector<64x128xf32>
    %16 = arith.maximumf %14, %15 : vector<64x128xf32>
    %17 = arith.truncf %16 : vector<64x128xf32> to vector<64x128xbf16>
    %c0_12 = arith.constant 0 : index
    %c0_13 = arith.constant 0 : index
    %18 = vector.load %arg6[%c0_12, %c0_13] : memref<128x128xbf16, #tpu.memory_space<vmem>>, vector<128x128xbf16>
    %cst_14 = arith.constant dense<0.000000e+00> : vector<64x128xf32>
    %19 = tpu.matmul %17, %18, %cst_14 {dimension_numbers = #tpu.dot_dimension_numbers<[1], [0], [0], [1], [0, 0, 1, 1], [], []>} : vector<64x128xbf16>, vector<128x128xbf16>, vector<64x128xf32> -> vector<64x128xf32>
    %c0_15 = arith.constant 0 : index
    %c0_16 = arith.constant 0 : index
    %20 = vector.load %arg7[%c0_15, %c0_16] : memref<1x128xf32, #tpu.memory_space<vmem>>, vector<1x128xf32>
    %21 = vector.broadcast %20 : vector<1x128xf32> to vector<64x128xf32>
    %22 = arith.addf %19, %21 : vector<64x128xf32>
    %cst_17 = arith.constant 0.000000e+00 : f32
    %23 = vector.broadcast %cst_17 : f32 to vector<64x128xf32>
    %24 = arith.maximumf %22, %23 : vector<64x128xf32>
    %25 = arith.truncf %24 : vector<64x128xf32> to vector<64x128xbf16>
    %c0_18 = arith.constant 0 : index
    %c0_19 = arith.constant 0 : index
    %26 = vector.load %arg8[%c0_18, %c0_19] : memref<128x256xbf16, #tpu.memory_space<vmem>>, vector<128x256xbf16>
    %cst_20 = arith.constant dense<0.000000e+00> : vector<64x256xf32>
    %27 = tpu.matmul %25, %26, %cst_20 {dimension_numbers = #tpu.dot_dimension_numbers<[1], [0], [0], [1], [0, 0, 1, 1], [], []>} : vector<64x128xbf16>, vector<128x256xbf16>, vector<64x256xf32> -> vector<64x256xf32>
    %c0_21 = arith.constant 0 : index
    %c0_22 = arith.constant 0 : index
    %28 = vector.load %arg9[%c0_21, %c0_22] : memref<1x256xf32, #tpu.memory_space<vmem>>, vector<1x256xf32>
    %29 = vector.broadcast %28 : vector<1x256xf32> to vector<64x256xf32>
    %30 = arith.addf %27, %29 : vector<64x256xf32>
    %c0_23 = arith.constant 0 : index
    %c0_24 = arith.constant 0 : index
    %31 = vector.load %arg10[%c0_23, %c0_24] : memref<64x256xf32, #tpu.memory_space<vmem>>, vector<64x256xf32>
    tpu.vector_store %arg10[%c0_23, %c0_24], %30 {strides = array<i32>} : memref<64x256xf32, #tpu.memory_space<vmem>>, vector<64x256xf32>,
    return
  }
  func.func @transform_0(%arg0: i32) -> (i32, i32) {
    %c0_i32 = arith.constant 0 : i32
    %c0_i32_0 = arith.constant 0 : i32
    return %arg0, %c0_i32 : i32, i32
  }
  func.func @transform_1(%arg0: i32) -> (i32, i32) {
    %c0_i32 = arith.constant 0 : i32
    %c0_i32_0 = arith.constant 0 : i32
    %c0_i32_1 = arith.constant 0 : i32
    return %c0_i32, %c0_i32_0 : i32, i32
  }
  func.func @transform_2(%arg0: i32) -> (i32, i32) {
    %c0_i32 = arith.constant 0 : i32
    %c0_i32_0 = arith.constant 0 : i32
    %c0_i32_1 = arith.constant 0 : i32
    return %c0_i32, %c0_i32_0 : i32, i32
  }
  func.func @transform_3(%arg0: i32) -> (i32, i32) {
    %c0_i32 = arith.constant 0 : i32
    %c0_i32_0 = arith.constant 0 : i32
    %c0_i32_1 = arith.constant 0 : i32
    return %c0_i32, %c0_i32_0 : i32, i32
  }
  func.func @transform_4(%arg0: i32) -> (i32, i32) {
    %c0_i32 = arith.constant 0 : i32
    %c0_i32_0 = arith.constant 0 : i32
    %c0_i32_1 = arith.constant 0 : i32
    return %c0_i32, %c0_i32_0 : i32, i32
  }
  func.func @transform_5(%arg0: i32) -> (i32, i32) {
    %c0_i32 = arith.constant 0 : i32
    %c0_i32_0 = arith.constant 0 : i32
    %c0_i32_1 = arith.constant 0 : i32
    return %c0_i32, %c0_i32_0 : i32, i32
  }
  func.func @transform_6(%arg0: i32) -> (i32, i32) {
    %c0_i32 = arith.constant 0 : i32
    %c0_i32_0 = arith.constant 0 : i32
    %c0_i32_1 = arith.constant 0 : i32
    return %c0_i32, %c0_i32_0 : i32, i32
  }
  func.func @transform_7(%arg0: i32) -> (i32, i32) {
    %c0_i32 = arith.constant 0 : i32
    %c0_i32_0 = arith.constant 0 : i32
    %c0_i32_1 = arith.constant 0 : i32
    return %c0_i32, %c0_i32_0 : i32, i32
  }
  func.func @transform_8(%arg0: i32) -> (i32, i32) {
    %c0_i32 = arith.constant 0 : i32
    %c0_i32_0 = arith.constant 0 : i32
    %c0_i32_1 = arith.constant 0 : i32
    return %c0_i32, %c0_i32_0 : i32, i32
  }
  func.func @transform_9(%arg0: i32) -> (i32, i32) {
    %c0_i32 = arith.constant 0 : i32
    %c0_i32_0 = arith.constant 0 : i32
    return %arg0, %c0_i32 : i32, i32
  }
}

module attributes {stable_mosaic.version = 11 : i64} {
  func.func @mlp_kernel(%arg0: i32, %arg1: memref<64x256xf32, #tpu.memory_space<vmem>>, %arg2: memref<256x128xbf16, #tpu.memory_space<vmem>>, %arg3: memref<1x128xf32, #tpu.memory_space<vmem>>, %arg4: memref<128x128xbf16, #tpu.memory_space<vmem>>, %arg5: memref<1x128xf32, #tpu.memory_space<vmem>>, %arg6: memref<128x128xbf16, #tpu.memory_space<vmem>>, %arg7: memref<1x128xf32, #tpu.memory_space<vmem>>, %arg8: memref<128x256xbf16, #tpu.memory_space<vmem>>, %arg9: memref<1x256xf32, #tpu.memory_space<vmem>>, %arg10: memref<64x256xf32, #tpu.memory_space<vmem>>) attributes {dimension_semantics = [#tpu.dimension_semantics<arbitrary>], iteration_bounds = array<i64: 1>, scalar_prefetch = 0 : i64, scratch_operands = 0 : i64, tpu.core_type = #tpu.core_type<tc>, window_params = [{transform_indices = @transform_0, window_bounds = array<i64: 64, 256>}, {pipeline_mode = #tpu.pipeline_mode<synchronous>, transform_indices = @transform_1, window_bounds = array<i64: 256, 128>}, {pipeline_mode = #tpu.pipeline_mode<synchronous>, transform_indices = @transform_2, window_bounds = array<i64: 1, 128>}, {pipeline_mode = #tpu.pipeline_mode<synchronous>, transform_indices = @transform_3, window_bounds = array<i64: 128, 128>}, {pipeline_mode = #tpu.pipeline_mode<synchronous>, transform_indices = @transform_4, window_bounds = array<i64: 1, 128>}, {pipeline_mode = #tpu.pipeline_mode<synchronous>, transform_indices = @transform_5, window_bounds = array<i64: 128, 128>}, {pipeline_mode = #tpu.pipeline_mode<synchronous>, transform_indices = @transform_6, window_bounds = array<i64: 1, 128>}, {pipeline_mode = #tpu.pipeline_mode<synchronous>, transform_indices = @transform_7, window_bounds = array<i64: 128, 256>}, {pipeline_mode = #tpu.pipeline_mode<synchronous>, transform_indices = @transform_8, window_bounds = array<i64: 1, 256>}, {transform_indices = @transform_9, window_bounds = array<i64: 64, 256>}]} {
    %c0 = arith.constant 0 : index
    %c0_0 = arith.constant 0 : index
    %0 = vector.load %arg1[%c0, %c0_0] : memref<64x256xf32, #tpu.memory_space<vmem>>, vector<64x256xf32>
    %1 = arith.truncf %0 : vector<64x256xf32> to vector<64x256xbf16>
    %c0_1 = arith.constant 0 : index
    %c0_2 = arith.constant 0 : index
    %2 = vector.load %arg2[%c0_1, %c0_2] : memref<256x128xbf16, #tpu.memory_space<vmem>>, vector<256x128xbf16>
    %cst = arith.constant dense<0.000000e+00> : vector<64x128xf32>
    %3 = tpu.matmul %1, %2, %cst {dimension_numbers = #tpu.dot_dimension_numbers<[1], [0], [0], [1], [0, 0, 1, 1], [], []>} : vector<64x256xbf16>, vector<256x128xbf16>, vector<64x128xf32> -> vector<64x128xf32>
    %c0_3 = arith.constant 0 : index
    %c0_4 = arith.constant 0 : index
    %4 = vector.load %arg3[%c0_3, %c0_4] : memref<1x128xf32, #tpu.memory_space<vmem>>, vector<1x128xf32>
    %5 = vector.broadcast %4 : vector<1x128xf32> to vector<64x128xf32>
    %6 = arith.addf %3, %5 : vector<64x128xf32>
    %cst_5 = arith.constant 0.000000e+00 : f32
    %7 = vector.broadcast %cst_5 : f32 to vector<64x128xf32>
    %8 = arith.maximumf %6, %7 : vector<64x128xf32>
    %9 = arith.truncf %8 : vector<64x128xf32> to vector<64x128xbf16>
    %c0_6 = arith.constant 0 : index
    %c0_7 = arith.constant 0 : index
    %10 = vector.load %arg4[%c0_6, %c0_7] : memref<128x128xbf16, #tpu.memory_space<vmem>>, vector<128x128xbf16>
    %cst_8 = arith.constant dense<0.000000e+00> : vector<64x128xf32>
    %11 = tpu.matmul %9, %10, %cst_8 {dimension_numbers = #tpu.dot_dimension_numbers<[1], [0], [0], [1], [0, 0, 1, 1], [], []>} : vector<64x128xbf16>, vector<128x128xbf16>, vector<64x128xf32> -> vector<64x128xf32>
    %c0_9 = arith.constant 0 : index
    %c0_10 = arith.constant 0 : index
    %12 = vector.load %arg5[%c0_9, %c0_10] : memref<1x128xf32, #tpu.memory_space<vmem>>, vector<1x128xf32>
    %13 = vector.broadcast %12 : vector<1x128xf32> to vector<64x128xf32>
    %14 = arith.addf %11, %13 : vector<64x128xf32>
    %cst_11 = arith.constant 0.000000e+00 : f32
    %15 = vector.broadcast %cst_11 : f32 to vector<64x128xf32>
    %16 = arith.maximumf %14, %15 : vector<64x128xf32>
    %17 = arith.truncf %16 : vector<64x128xf32> to vector<64x128xbf16>
    %c0_12 = arith.constant 0 : index
    %c0_13 = arith.constant 0 : index
    %18 = vector.load %arg6[%c0_12, %c0_13] : memref<128x128xbf16, #tpu.memory_space<vmem>>, vector<128x128xbf16>
    %cst_14 = arith.constant dense<0.000000e+00> : vector<64x128xf32>
    %19 = tpu.matmul %17, %18, %cst_14 {dimension_numbers = #tpu.dot_dimension_numbers<[1], [0], [0], [1], [0, 0, 1, 1], [], []>} : vector<64x128xbf16>, vector<128x128xbf16>, vector<64x128xf32> -> vector<64x128xf32>
    %c0_15 = arith.constant 0 : index
    %c0_16 = arith.constant 0 : index
    %20 = vector.load %arg7[%c0_15, %c0_16] : memref<1x128xf32, #tpu.memory_space<vmem>>, vector<1x128xf32>
    %21 = vector.broadcast %20 : vector<1x128xf32> to vector<64x128xf32>
    %22 = arith.addf %19, %21 : vector<64x128xf32>
    %cst_17 = arith.constant 0.000000e+00 : f32
    %23 = vector.broadcast %cst_17 : f32 to vector<64x128xf32>
    %24 = arith.maximumf %22, %23 : vector<64x128xf32>
    %25 = arith.truncf %24 : vector<64x128xf32> to vector<64x128xbf16>
    %c0_18 = arith.constant 0 : index
    %c0_19 = arith.constant 0 : index
    %26 = vector.load %arg8[%c0_18, %c0_19] : memref<128x256xbf16, #tpu.memory_space<vmem>>, vector<128x256xbf16>
    %cst_20 = arith.constant dense<0.000000e+00> : vector<64x256xf32>
    %27 = tpu.matmul %25, %26, %cst_20 {dimension_numbers = #tpu.dot_dimension_numbers<[1], [0], [0], [1], [0, 0, 1, 1], [], []>} : vector<64x128xbf16>, vector<128x256xbf16>, vector<64x256xf32> -> vector<64x256xf32>
    %c0_21 = arith.constant 0 : index
    %c0_22 = arith.constant 0 : index
    %28 = vector.load %arg9[%c0_21, %c0_22] : memref<1x256xf32, #tpu.memory_space<vmem>>, vector<1x256xf32>
    %29 = vector.broadcast %28 : vector<1x256xf32> to vector<64x256xf32>
    %30 = arith.addf %27, %29 : vector<64x256xf32>
    %c0_23 = arith.constant 0 : index
    %c0_24 = arith.constant 0 : index
    %31 = vector.load %arg10[%c0_23, %c0_24] : memref<64x256xf32, #tpu.memory_space<vmem>>, vector<64x256xf32>
    tpu.vector_store %arg10[%c0_23, %c0_24], %30 {strides = array<i32>} : memref<64x256xf32, #tpu.memory_space<vmem>>, vector<64x256xf32>,
    return
  }
  func.func @transform_0(%arg0: i32) -> (i32, i32) {
    %c0_i32 = arith.constant 0 : i32
    %c0_i32_0 = arith.constant 0 : i32
    return %arg0, %c0_i32 : i32, i32
  }
  func.func @transform_1(%arg0: i32) -> (i32, i32) {
    %c0_i32 = arith.constant 0 : i32
    %c0_i32_0 = arith.constant 0 : i32
    %c0_i32_1 = arith.constant 0 : i32
    return %c0_i32, %c0_i32_0 : i32, i32
  }
  func.func @transform_2(%arg0: i32) -> (i32, i32) {
    %c0_i32 = arith.constant 0 : i32
    %c0_i32_0 = arith.constant 0 : i32
    %c0_i32_1 = arith.constant 0 : i32
    return %c0_i32, %c0_i32_0 : i32, i32
  }
  func.func @transform_3(%arg0: i32) -> (i32, i32) {
    %c0_i32 = arith.constant 0 : i32
    %c0_i32_0 = arith.constant 0 : i32
    %c0_i32_1 = arith.constant 0 : i32
    return %c0_i32, %c0_i32_0 : i32, i32
  }
  func.func @transform_4(%arg0: i32) -> (i32, i32) {
    %c0_i32 = arith.constant 0 : i32
    %c0_i32_0 = arith.constant 0 : i32
    %c0_i32_1 = arith.constant 0 : i32
    return %c0_i32, %c0_i32_0 : i32, i32
  }
  func.func @transform_5(%arg0: i32) -> (i32, i32) {
    %c0_i32 = arith.constant 0 : i32
    %c0_i32_0 = arith.constant 0 : i32
    %c0_i32_1 = arith.constant 0 : i32
    return %c0_i32, %c0_i32_0 : i32, i32
  }
  func.func @transform_6(%arg0: i32) -> (i32, i32) {
    %c0_i32 = arith.constant 0 : i32
    %c0_i32_0 = arith.constant 0 : i32
    %c0_i32_1 = arith.constant 0 : i32
    return %c0_i32, %c0_i32_0 : i32, i32
  }
  func.func @transform_7(%arg0: i32) -> (i32, i32) {
    %c0_i32 = arith.constant 0 : i32
    %c0_i32_0 = arith.constant 0 : i32
    %c0_i32_1 = arith.constant 0 : i32
    return %c0_i32, %c0_i32_0 : i32, i32
  }
  func.func @transform_8(%arg0: i32) -> (i32, i32) {
    %c0_i32 = arith.constant 0 : i32
    %c0_i32_0 = arith.constant 0 : i32
    %c0_i32_1 = arith.constant 0 : i32
    return %c0_i32, %c0_i32_0 : i32, i32
  }
  func.func @transform_9(%arg0: i32) -> (i32, i32) {
    %c0_i32 = arith.constant 0 : i32
    %c0_i32_0 = arith.constant 0 : i32
    return %arg0, %c0_i32 : i32, i32
  }
}

</mosaic_0001>

<bundles_post_ra>
// kernel: tpu_custom_call.1
= control target key start
LH: loop header
LB: loop body
LE: loop exit
PB: predicated region body
PF: predicated region fallthrough
CT: control target
= control target key end

     0   :  { %14 = vsyncpa [#allocation3], 0  ;;  %s1335_s0 = inlined_call_operand.hbm [shape: f32[64,256], index: 0, kind: input, shape index: {}]   ;;  %s1336_s1 = inlined_call_operand.hbm [shape: bf16[256,128], index: 1, kind: input, shape index: {}]   ;;  %s1337_s2 = inlined_call_operand.vmem [shape: f32[1,128], index: 2, kind: input, shape index: {}]   ;;  %s1338_s3 = inlined_call_operand.hbm [shape: bf16[128,128], index: 3, kind: input, shape index: {}]   ;;  %s1339_s4 = inlined_call_operand.hbm [shape: f32[1,128], index: 4, kind: input, shape index: {}]   ;;  %s1340_s5 = inlined_call_operand.hbm [shape: bf16[128,128], index: 5, kind: input, shape index: {}]   ;;  %s1341_s6 = inlined_call_operand.vmem [shape: f32[1,128], index: 6, kind: input, shape index: {}]   ;;  %s1342_s7 = inlined_call_operand.hbm [shape: bf16[128,256], index: 7, kind: input, shape index: {}]   ;;  %s1343_s8 = inlined_call_operand.vmem [shape: f32[1,256], index: 8, kind: input, shape index: {}]   ;;  %s1344_s9 = inlined_call_operand.hbm [shape: f32[64,256], index: 9, kind: output, shape index: {}]  }
   0x1   :  { %15 = vsyncpa [#allocation6], 0 }
   0x2   :  { %16 = vsyncpa [#allocation9], 0 }
   0x3   :  { %17 = vsyncpa [#allocation12], 0  ;;  %s36_s11 = sshll.u32 %s1336_s1, 4  ;;  %s37_s11 = int_to_ptr.hbm [resolvable:$true] %s36_s11 }
   0x4   :  { %18 = vsyncpa [#allocation4], 0  ;;  %s1217_s12 = smov [#allocation5]   ;;  %s65_s16 = sshll.u32 %s1339_s4, 4  ;;  %s66_s16 = int_to_ptr.hbm [resolvable:$true] %s65_s16 }
   0x5   :  { %s38_s13 = sshll.u32 %s1217_s12, 4  ;;  %s1218_s17 = smov 64   ;;  %s39_s13 = int_to_ptr.vmem [resolvable:$true] %s38_s13 }
   0x6   :  { %s1219_s18 = smov 4   ;;  %s1220_s19 = smov [#allocation8]  }
   0x7   :  { %44 = dma.hbm_to_vmem [thread:$0]  %s37_s11, 2048, %s39_s13, [#allocation6], %s1218_s17, %s1218_s17, %s1219_s18  }
   0x8   :  { %s67_s20 = sshll.u32 %s1220_s19, 4  ;;  %s23_s22 = sshll.u32 %s1335_s0, 4  ;;  %s68_s20 = int_to_ptr.vmem [resolvable:$true] %s67_s20  ;;  %s24_s22 = int_to_ptr.hbm [resolvable:$true] %s23_s22 }
   0x9   :  { %70 = dma.hbm_to_vmem [thread:$0]  %s66_s16, 16, %s68_s20, [#allocation9]  }
   0xa   :  { %s1221_s23 = smov [#allocation2]   ;;  %s51_s26 = sshll.u32 %s1338_s3, 4  ;;  %s52_s26 = int_to_ptr.hbm [resolvable:$true] %s51_s26 }
   0xb   :  { %s25_s24 = sshll.u32 %s1221_s23, 4  ;;  %s1222_s27 = smov 256   ;;  %s26_s24 = int_to_ptr.vmem [resolvable:$true] %s25_s24 }
   0xc   :  { %s1223_s28 = smov 16   ;;  %s1224_s29 = smov [#allocation7]  }
   0xd   :  { %31 = dma.hbm_to_vmem [thread:$0]  %s24_s22, 2048, %s26_s24, [#allocation3], %s1222_s27, %s1222_s27, %s1223_s28  }
   0xe   :  { %s53_s30 = sshll.u32 %s1224_s29, 4  ;;  %s75_s11 = sshll.u32 %s1340_s5, 4  ;;  %s54_s30 = int_to_ptr.vmem [resolvable:$true] %s53_s30  ;;  %s76_s11 = int_to_ptr.hbm [resolvable:$true] %s75_s11 }
   0xf   :  { %59 = dma.hbm_to_vmem [thread:$0]  %s52_s26, 1024, %s54_s30, [#allocation6], %s1218_s17, %s1218_s17, %s1219_s18  }
  0x10   :  { %s90_s13 = sshll.u32 %s1342_s7, 4  ;;  %s1225_s14 = smov [#allocation10]   ;;  %s91_s13 = int_to_ptr.hbm [resolvable:$true] %s90_s13 }
  0x11   :  { %s77_s15 = sshll.u32 %s1225_s14, 4  ;;  %s1226_s16 = smov [#allocation11]   ;;  %s78_s15 = int_to_ptr.vmem [resolvable:$true] %s77_s15 }
  0x12   :  { %83 = dma.hbm_to_vmem [thread:$0]  %s76_s11, 1024, %s78_s15, [#allocation9], %s1218_s17, %s1218_s17, %s1219_s18  }
  0x13   :  { %s92_s5 = sshll.u32 %s1226_s16, 4  ;;  %s1227_s19 = smov 128   ;;  %s93_s5 = int_to_ptr.vmem [resolvable:$true] %s92_s5 }
  0x14   :  { %s1228_s20 = smov 8  }
  0x15   :  { %98 = dma.hbm_to_vmem [thread:$0]  %s91_s13, 2048, %s93_s5, [#allocation12], %s1227_s19, %s1227_s19, %s1228_s20  }
  0x16   :  { %1207 = dma.done.wait [#allocation3], 2048  }
  0x17   :  { %1208 = vsyncadd [#allocation3], 4294965248 }
  0x18   :  { %1209 = dma.done.wait [#allocation6], 3072  }
  0x19   :  { %1210 = vsyncadd [#allocation6], 4294964224 }
  0x1a   :  { %1211 = dma.done.wait [#allocation9], 1040  }
  0x1b   :  { %1212 = vsyncadd [#allocation9], 4294966256 }
  0x1c   :  { %1213 = dma.done.wait [#allocation12], 2048  }
  0x1d   :  { %1214 = vsyncadd [#allocation12], 4294965248  ;;  %v966_v0 = vld [vmem:[#allocation5 + $0x38] sm:$0xff]  ;;  %v965_v2 = vld [vmem:[#allocation5 + $0x30] sm:$0xff]  ;;  %s751_s24 = sshll.u32 %s1344_s9, 4  ;;  %s752_s24 = int_to_ptr.hbm [resolvable:$true] %s751_s24 }
  0x1e   :  { %v974_v1 = vld [vmem:[#allocation5 + $0x78] sm:$0xff]  ;;  %281 = vmatpush.bf16.msra.mxu0 %v966_v0  ;;  %v973_v3 = vld [vmem:[#allocation5 + $0x70] sm:$0xff]  ;;  %1007 = vmatpush.bf16.msra.mxu2 %v966_v0  ;;  %v964_v4 = vld [vmem:[#allocation5 + $0x28] sm:$0xff] }
  0x1f   :  { %310 = vmatpush.bf16.msra.mxu1 %v974_v1  ;;  %1015 = vmatpush.bf16.msra.mxu3 %v974_v1  ;;  %v972_v5 = vld [vmem:[#allocation5 + $0x68] sm:$0xff]  ;;  %v963_v6 = vld [vmem:[#allocation5 + $0x20] sm:$0xff]  ;;  %v962_v8 = vld [vmem:[#allocation5 + $0x18] sm:$0xff] }
  0x20   :  { %v971_v7 = vld [vmem:[#allocation5 + $0x60] sm:$0xff]  ;;  %v970_v9 = vld [vmem:[#allocation5 + $0x58] sm:$0xff]  ;;  %v961_v10 = vld [vmem:[#allocation5 + $0x10] sm:$0xff] }
  0x21   :  { %v969_v11 = vld [vmem:[#allocation5 + $0x50] sm:$0xff]  ;;  %v960_v12 = vld [vmem:[#allocation5 + $0x8] sm:$0xff]  ;;  %v959_v14 = vld [vmem:[#allocation5] sm:$0xff] }
  0x22   :  { %282 = vmatpush.bf16.msra.mxu0 %v965_v2  ;;  %1008 = vmatpush.bf16.msra.mxu2 %v965_v2  ;;  %v968_v13 = vld [vmem:[#allocation5 + $0x48] sm:$0xff]  ;;  %v967_v15 = vld [vmem:[#allocation5 + $0x40] sm:$0xff]  ;;  %v127_v17 = vld [vmem:[#allocation2 + $0x10] sm:$0xff] }
  0x23   :  { %311 = vmatpush.bf16.msra.mxu1 %v973_v3  ;;  %1016 = vmatpush.bf16.msra.mxu3 %v973_v3  ;;  %v125_v16 = vld [vmem:[#allocation2] sm:$0xff]  ;;  %v126_v18 = vld [vmem:[#allocation2 + $0x8] sm:$0xff]  ;;  %v128_v19 = vld [vmem:[#allocation2 + $0x18] sm:$0xff] }
  0x24   :  { %v133_v20 = vld [vmem:[#allocation2 + $0x40] sm:$0xff]  ;;  %v135_v21 = vld [vmem:[#allocation2 + $0x50] sm:$0xff]  ;;  %v134_v22 = vld [vmem:[#allocation2 + $0x48] sm:$0xff]  ;;  %v141_v25 = vpack.c.bf16 %v127_v17, %v125_v16  ;;  %v142_v26 = vpack.c.bf16 %v128_v19, %v126_v18 }
  0x25   :  { %v136_v23 = vld [vmem:[#allocation2 + $0x58] sm:$0xff]  ;;  %v145_v27 = vpack.c.bf16 %v135_v21, %v133_v20  ;;  %v981_v29 = vld [vmem:[#allocation7 + $0x30] sm:$0xff]  ;;  %v980_v30 = vld [vmem:[#allocation7 + $0x28] sm:$0xff] }
  0x26   :  { %283 = vmatpush.bf16.msra.mxu0 %v964_v4  ;;  %1009 = vmatpush.bf16.msra.mxu2 %v964_v4  ;;  %v982_v24 = vld [vmem:[#allocation7 + $0x38] sm:$0xff]  ;;  %v146_v28 = vpack.c.bf16 %v136_v23, %v134_v22  ;;  %v979_v31 = vld [vmem:[#allocation7 + $0x20] sm:$0xff]  ;;  %v131_v33 = vld [vmem:[#allocation2 + $0x30] sm:$0xff] }
  0x27   :  { %312 = vmatpush.bf16.msra.mxu1 %v972_v5  ;;  %1017 = vmatpush.bf16.msra.mxu3 %v972_v5  ;;  %v129_v32 = vld [vmem:[#allocation2 + $0x20] sm:$0xff]  ;;  %v130_v34 = vld [vmem:[#allocation2 + $0x28] sm:$0xff]  ;;  %v132_v35 = vld [vmem:[#allocation2 + $0x38] sm:$0xff] }
  0x28   :  { %v137_v36 = vld [vmem:[#allocation2 + $0x60] sm:$0xff]  ;;  %v139_v37 = vld [vmem:[#allocation2 + $0x70] sm:$0xff]  ;;  %v138_v38 = vld [vmem:[#allocation2 + $0x68] sm:$0xff]  ;;  %v143_v40 = vpack.c.bf16 %v131_v33, %v129_v32  ;;  %v144_v41 = vpack.c.bf16 %v132_v35, %v130_v34 }
  0x29   :  { %v140_v39 = vld [vmem:[#allocation2 + $0x78] sm:$0xff]  ;;  %v147_v42 = vpack.c.bf16 %v139_v37, %v137_v36  ;;  %v977_v45 = vld [vmem:[#allocation7 + $0x10] sm:$0xff]  ;;  %v976_v46 = vld [vmem:[#allocation7 + $0x8] sm:$0xff] }
  0x2a   :  { %284 = vmatpush.bf16.msra.mxu0 %v963_v6  ;;  %1010 = vmatpush.bf16.msra.mxu2 %v963_v6  ;;  %v148_v43 = vpack.c.bf16 %v140_v39, %v138_v38  ;;  %v978_v44 = vld [vmem:[#allocation7 + $0x18] sm:$0xff]  ;;  %v975_v47 = vld [vmem:[#allocation7] sm:$0xff]  ;;  %v988_v18 = vld [vmem:[#allocation10 + $0x28] sm:$0xff] }
  0x2b   :  { %313 = vmatpush.bf16.msra.mxu1 %v971_v7  ;;  %1018 = vmatpush.bf16.msra.mxu3 %v971_v7  ;;  %v1036_v50 = vld [vmem:[%s1337_s2] ss:$0 sm:$0xff]  ;;  %v987_v22 = vld [vmem:[#allocation10 + $0x20] sm:$0xff]  ;;  %v985_v34 = vld [vmem:[#allocation10 + $0x10] sm:$0xff] }
  0x2c   :  { %v984_v35 = vld [vmem:[#allocation10 + $0x8] sm:$0xff]  ;;  %v983_v36 = vld [vmem:[#allocation10] sm:$0xff]  ;;  %v1313_v38 = vld [vmem:[#allocation8] ss:$0 sm:$0xff] }
  0x2e   :  { %285 = vmatpush.bf16.msra.mxu0 %v962_v8  ;;  %1011 = vmatpush.bf16.msra.mxu2 %v962_v8 }
  0x2f   :  { %314 = vmatpush.bf16.msra.mxu1 %v970_v9  ;;  %1019 = vmatpush.bf16.msra.mxu3 %v970_v9 }
  0x32   :  { %286 = vmatpush.bf16.msra.mxu0 %v961_v10  ;;  %1012 = vmatpush.bf16.msra.mxu2 %v961_v10 }
  0x33   :  { %315 = vmatpush.bf16.msra.mxu1 %v969_v11  ;;  %1020 = vmatpush.bf16.msra.mxu3 %v969_v11  ;;  %v990_v11 = vld [vmem:[#allocation10 + $0x38] sm:$0xff] }
  0x36   :  { %287 = vmatpush.bf16.msra.mxu0 %v960_v12  ;;  %1013 = vmatpush.bf16.msra.mxu2 %v960_v12 }
  0x37   :  { %316 = vmatpush.bf16.msra.mxu1 %v968_v13  ;;  %1021 = vmatpush.bf16.msra.mxu3 %v968_v13 }
  0x3a   :  { %288 = vmatpush.bf16.msra.mxu0 %v959_v14  ;;  %1014 = vmatpush.bf16.msra.mxu2 %v959_v14  ;;  %v989_v14 = vld [vmem:[#allocation10 + $0x30] sm:$0xff] }
  0x3b   :  { %317 = vmatpush.bf16.msra.mxu1 %v967_v15  ;;  %1022 = vmatpush.bf16.msra.mxu3 %v967_v15 }
  0x3d   :  { %289 = vmatmul.bf16.vlgmr.msra.gmra.mxu0 %v141_v25  ;;  %299 = vmatmul.bf16.vlgmr.msra.gmra.mxu2 %v145_v27 }
  0x3e   :  { %419 = vmatpush.bf16.msrb.mxu2 %v982_v24  ;;  %318 = vmatmul.bf16.vlgmr.msra.gmra.mxu1 %v142_v26  ;;  %v986_v24 = vld [vmem:[#allocation10 + $0x18] sm:$0xff] }
  0x3f   :  { %328 = vmatmul.bf16.vlgmr.msra.gmra.mxu3 %v146_v28 }
  0x40   :  { %528 = vmatpush.bf16.msrb.mxu3 %v990_v11  ;;  %v999_v11 = vld [vmem:[#allocation11 + $0x44] sm:$0xf] }
  0x42   :  { %420 = vmatpush.bf16.msrb.mxu2 %v981_v29 }
  0x44   :  { %529 = vmatpush.bf16.msrb.mxu3 %v989_v14 }
  0x46   :  { %421 = vmatpush.bf16.msrb.mxu2 %v980_v30 }
  0x48   :  { %530 = vmatpush.bf16.msrb.mxu3 %v988_v18  ;;  %v921_v18 = vld [vmem:[#allocation11 + $0x30] sm:$0xf] }
  0x4a   :  { %422 = vmatpush.bf16.msrb.mxu2 %v979_v31 }
  0x4c   :  { %531 = vmatpush.bf16.msrb.mxu3 %v987_v22 }
  0x4d   :  { %294 = vmatmul.bf16.gmra.mxu0 %v143_v40  ;;  %304 = vmatmul.bf16.gmra.mxu2 %v147_v42 }
  0x4e   :  { %323 = vmatmul.bf16.gmra.mxu1 %v144_v41  ;;  %423 = vmatpush.bf16.msrb.mxu2 %v978_v44 }
  0x4f   :  { %333 = vmatmul.bf16.gmra.mxu3 %v148_v43 }
  0x50   :  { %532 = vmatpush.bf16.msrb.mxu3 %v986_v24 }
  0x52   :  { %424 = vmatpush.bf16.msrb.mxu2 %v977_v45 }
  0x54   :  { %533 = vmatpush.bf16.msrb.mxu3 %v985_v34  ;;  %v995_v34 = vld [vmem:[#allocation11 + $0x24] sm:$0xf] }
  0x56   :  { %425 = vmatpush.bf16.msrb.mxu2 %v976_v46 }
  0x58   :  { %534 = vmatpush.bf16.msrb.mxu3 %v984_v35 }
  0x5a   :  { %426 = vmatpush.bf16.msrb.mxu2 %v975_v47 }
  0x5c   :  { %535 = vmatpush.bf16.msrb.mxu3 %v983_v36  ;;  %v915_v36 = vld [vmem:[#allocation11 + $0x28] sm:$0xf0] }
  0xba   :  { %v290_v48 = vpop.f32.mrf.mxu0 }
  0xbb   :  { %v319_v49 = vpop.f32.mrf.mxu1  ;;  %v291_v51 = vadd.f32 %v1036_v50, %v290_v48 }
  0xbd   :  { %v320_v54 = vadd.f32 %v319_v49, %v291_v51 }
  0xbf   :  { %v339_v57 = vmax.f32 %v320_v54, 0.0  ;;  %v1005_v54 = vld [vmem:[#allocation11 + $0x74] sm:$0xf] }
  0xc0   :  { %v300_v62 = vpop.f32.mrf.mxu2 }
  0xc1   :  { %v301_v12 = vadd.f32 %v1036_v50, %v300_v62  ;;  %v947_v62 = vld [vmem:[#allocation11 + $0x68] sm:$0xf0] }
  0xc2   :  { %v292_v52 = vpop.f32.mrf.mxu0  ;;  %v329_v0 = vpop.f32.mrf.mxu3 }
  0xc3   :  { %v321_v53 = vpop.f32.mrf.mxu1  ;;  %v293_v55 = vadd.f32 %v1036_v50, %v292_v52  ;;  %v330_v16 = vadd.f32 %v329_v0, %v301_v12  ;;  %v953_v52 = vld [vmem:[#allocation11 + $0x70] sm:$0xf]  ;;  %v931_v12 = vld [vmem:[#allocation11 + $0x48] sm:$0xf0] }
  0xc5   :  { %v322_v56 = vadd.f32 %v321_v53, %v293_v55  ;;  %v343_v20 = vmax.f32 %v330_v16, 0.0  ;;  %v1006_v53 = vld [vmem:[#allocation11 + $0x74] sm:$0xf0] }
  0xc7   :  { %v340_v58 = vmax.f32 %v322_v56, 0.0  ;;  %v954_v56 = vor.u32 %v1006_v53, %v953_v52 }
  0xc8   :  { %v302_v6 = vpop.f32.mrf.mxu2 }
  0xc9   :  { %v347_v59 = vpack.c.bf16 %v340_v58, %v339_v57  ;;  %v303_v13 = vadd.f32 %v1036_v50, %v302_v6  ;;  %v955_v57 = vld [vmem:[#allocation11 + $0x78] sm:$0xf0]  ;;  %v945_v58 = vld [vmem:[#allocation11 + $0x60] sm:$0xf]  ;;  %671 = vmatpush.bf16.msrb.mxu0 %v954_v56 }
  0xca   :  { %v295_v60 = vpop.f32.mrf.mxu0  ;;  %v331_v10 = vpop.f32.mrf.mxu3 }
  0xcb   :  { %v324_v61 = vpop.f32.mrf.mxu1  ;;  %427 = vmatmul.bf16.vlgmr.msrb.gmra.mxu2 %v347_v59  ;;  %v296_v63 = vadd.f32 %v1036_v50, %v295_v60  ;;  %v332_v17 = vadd.f32 %v331_v10, %v303_v13  ;;  %v1004_v59 = vld [vmem:[#allocation11 + $0x64] sm:$0xf0]  ;;  %v958_v60 = vor.u32 %v1005_v54, %v955_v57 }
  0xcd   :  { %v325_v2 = vadd.f32 %v324_v61, %v296_v63  ;;  %v344_v21 = vmax.f32 %v332_v17, 0.0  ;;  %v1003_v61 = vld [vmem:[#allocation11 + $0x64] sm:$0xf]  ;;  %v946_v63 = vor.u32 %v1004_v59, %v945_v58  ;;  %700 = vmatpush.bf16.msrb.mxu1 %v958_v60  ;;  %v934_v17 = vor.u32 %v999_v11, %v931_v12 }
  0xce   :  { %v950_v0 = vor.u32 %v1003_v61, %v947_v62 }
  0xcf   :  { %v341_v7 = vmax.f32 %v325_v2, 0.0  ;;  %v349_v23 = vpack.c.bf16 %v344_v21, %v343_v20  ;;  %v1002_v2 = vld [vmem:[#allocation11 + $0x54] sm:$0xf0]  ;;  %672 = vmatpush.bf16.msrb.mxu0 %v946_v63  ;;  %v997_v20 = vld [vmem:[#allocation11 + $0x34] sm:$0xf] }
  0xd0   :  { %v305_v15 = vpop.f32.mrf.mxu2  ;;  %v923_v21 = vld [vmem:[#allocation11 + $0x38] sm:$0xf0] }
  0xd1   :  { %v306_v26 = vadd.f32 %v1036_v50, %v305_v15  ;;  %701 = vmatpush.bf16.msrb.mxu1 %v950_v0  ;;  %v926_v24 = vor.u32 %v997_v20, %v923_v21 }
  0xd2   :  { %v297_v1 = vpop.f32.mrf.mxu0  ;;  %v334_v19 = vpop.f32.mrf.mxu3 }
  0xd3   :  { %v298_v3 = vadd.f32 %v1036_v50, %v297_v1  ;;  %v326_v4 = vpop.f32.mrf.mxu1  ;;  %v335_v29 = vadd.f32 %v334_v19, %v306_v26  ;;  %v937_v1 = vld [vmem:[#allocation11 + $0x50] sm:$0xf]  ;;  %v998_v19 = vld [vmem:[#allocation11 + $0x34] sm:$0xf0] }
  0xd5   :  { %v327_v5 = vadd.f32 %v326_v4, %v298_v3  ;;  %v345_v31 = vmax.f32 %v335_v29, 0.0  ;;  %v1001_v3 = vld [vmem:[#allocation11 + $0x54] sm:$0xf]  ;;  %v939_v4 = vld [vmem:[#allocation11 + $0x58] sm:$0xf0] }
  0xd7   :  { %v342_v8 = vmax.f32 %v327_v5, 0.0  ;;  %v938_v5 = vor.u32 %v1002_v2, %v937_v1 }
  0xd8   :  { %v307_v25 = vpop.f32.mrf.mxu2 }
  0xd9   :  { %v348_v9 = vpack.c.bf16 %v342_v8, %v341_v7  ;;  %v308_v27 = vadd.f32 %v1036_v50, %v307_v25  ;;  %v942_v7 = vor.u32 %v1001_v3, %v939_v4  ;;  %v929_v8 = vld [vmem:[#allocation11 + $0x40] sm:$0xf]  ;;  %673 = vmatpush.bf16.msrb.mxu0 %v938_v5 }
  0xda   :  { %v336_v28 = vpop.f32.mrf.mxu3 }
  0xdb   :  { %432 = vmatmul.bf16.gmra.mxu2 %v348_v9  ;;  %v337_v30 = vadd.f32 %v336_v28, %v308_v27  ;;  %v1000_v9 = vld [vmem:[#allocation11 + $0x44] sm:$0xf0]  ;;  %702 = vmatpush.bf16.msrb.mxu1 %v942_v7 }
  0xdc   :  { %v930_v14 = vor.u32 %v1000_v9, %v929_v8 }
  0xdd   :  { %v346_v32 = vmax.f32 %v337_v30, 0.0 }
  0xde   :  { %674 = vmatpush.bf16.msrb.mxu0 %v930_v14 }
  0xdf   :  { %v350_v33 = vpack.c.bf16 %v346_v32, %v345_v31  ;;  %703 = vmatpush.bf16.msrb.mxu1 %v934_v17  ;;  %v913_v32 = vld [vmem:[#allocation11 + $0x20] sm:$0xf] }
  0xe3   :  { %704 = vmatpush.bf16.msrb.mxu1 %v926_v24 }
  0xeb   :  { %437 = vmatmul.bf16.gmra.mxu2 %v349_v23  ;;  %v922_v23 = vor.u32 %v998_v19, %v921_v18 }
  0xed   :  { %675 = vmatpush.bf16.msrb.mxu0 %v922_v23 }
  0xfb   :  { %442 = vmatmul.bf16.gmra.mxu2 %v350_v33  ;;  %v996_v33 = vld [vmem:[#allocation11 + $0x24] sm:$0xf0] }
  0xfc   :  { %v914_v35 = vor.u32 %v996_v33, %v913_v32 }
  0xfe   :  { %676 = vmatpush.bf16.msrb.mxu0 %v914_v35 }
 0x14e   :  { %v428_v37 = vpop.f32.mrf.mxu2 }
 0x14f   :  { %v429_v39 = vadd.f32 %v1313_v38, %v428_v37  ;;  %v918_v37 = vor.u32 %v995_v34, %v915_v36 }
 0x151   :  { %v448_v42 = vmax.f32 %v429_v39, 0.0  ;;  %v905_v39 = vld [vmem:[#allocation11 + $0x10] sm:$0xf]  ;;  %705 = vmatpush.bf16.msrb.mxu1 %v918_v37 }
 0x156   :  { %v430_v40 = vpop.f32.mrf.mxu2 }
 0x157   :  { %v431_v41 = vadd.f32 %v1313_v38, %v430_v40  ;;  %v994_v40 = vld [vmem:[#allocation11 + $0x14] sm:$0xf0] }
 0x159   :  { %v449_v43 = vmax.f32 %v431_v41, 0.0  ;;  %v993_v41 = vld [vmem:[#allocation11 + $0x14] sm:$0xf] }
 0x15b   :  { %v456_v44 = vpack.c.bf16 %v449_v43, %v448_v42  ;;  %v906_v42 = vor.u32 %v994_v40, %v905_v39  ;;  %v907_v43 = vld [vmem:[#allocation11 + $0x18] sm:$0xf0] }
 0x15d   :  { %536 = vmatmul.bf16.vlgmr.msrb.gmra.mxu3 %v456_v44  ;;  %v910_v44 = vor.u32 %v993_v41, %v907_v43  ;;  %677 = vmatpush.bf16.msrb.mxu0 %v906_v42 }
 0x15e   :  { %v433_v45 = vpop.f32.mrf.mxu2 }
 0x15f   :  { %v434_v46 = vadd.f32 %v1313_v38, %v433_v45  ;;  %706 = vmatpush.bf16.msrb.mxu1 %v910_v44  ;;  %v992_v45 = vld [vmem:[#allocation11 + $0x4] sm:$0xf0] }
 0x161   :  { %v450_v49 = vmax.f32 %v434_v46, 0.0  ;;  %v991_v46 = vld [vmem:[#allocation11 + $0x4] sm:$0xf] }
 0x166   :  { %v435_v47 = vpop.f32.mrf.mxu2 }
 0x167   :  { %v436_v48 = vadd.f32 %v1313_v38, %v435_v47 }
 0x169   :  { %v451_v50 = vmax.f32 %v436_v48, 0.0  ;;  %v899_v48 = vld [vmem:[#allocation11 + $0x8] sm:$0xf0] }
 0x16b   :  { %v457_v51 = vpack.c.bf16 %v451_v50, %v450_v49  ;;  %v902_v49 = vor.u32 %v991_v46, %v899_v48 }
 0x16d   :  { %541 = vmatmul.bf16.gmra.mxu3 %v457_v51  ;;  %707 = vmatpush.bf16.msrb.mxu1 %v902_v49  ;;  %v1038_v51 = vld [vmem:[%s1341_s6] ss:$0 sm:$0xff] }
 0x16e   :  { %v438_v55 = vpop.f32.mrf.mxu2 }
 0x16f   :  { %v439_v6 = vadd.f32 %v1313_v38, %v438_v55 }
 0x171   :  { %v452_v15 = vmax.f32 %v439_v6, 0.0 }
 0x176   :  { %v440_v10 = vpop.f32.mrf.mxu2 }
 0x177   :  { %v441_v13 = vadd.f32 %v1313_v38, %v440_v10 }
 0x179   :  { %v453_v16 = vmax.f32 %v441_v13, 0.0 }
 0x17b   :  { %v458_v22 = vpack.c.bf16 %v453_v16, %v452_v15  ;;  %v585_v15 = vld [vmem:[%s1343_s8] sm:$0x3]  ;;  %s1229_s8 = smov [#allocation13]  }
 0x17c   :  { %v587_v16 = vperm.slane %v585_v15, 0  ;;  %v588_v17 = vperm.slane %v585_v15, 1  ;;  %s749_s1 = sshll.u32 %s1229_s8, 4  ;;  %s750_s1 = int_to_ptr.vmem [resolvable:$true] %s749_s1 }
 0x17d   :  { %546 = vmatmul.bf16.gmra.mxu3 %v458_v22 }
 0x17e   :  { %v443_v25 = vpop.f32.mrf.mxu2 }
 0x17f   :  { %v444_v26 = vadd.f32 %v1313_v38, %v443_v25 }
 0x181   :  { %v454_v29 = vmax.f32 %v444_v26, 0.0 }
 0x186   :  { %v445_v27 = vpop.f32.mrf.mxu2 }
 0x187   :  { %v446_v28 = vadd.f32 %v1313_v38, %v445_v27  ;;  %v897_v38 = vld [vmem:[#allocation11] sm:$0xf] }
 0x188   :  { %v898_v47 = vor.u32 %v992_v45, %v897_v38 }
 0x189   :  { %v455_v30 = vmax.f32 %v446_v28, 0.0 }
 0x18a   :  { %678 = vmatpush.bf16.msrb.mxu0 %v898_v47 }
 0x18b   :  { %v459_v31 = vpack.c.bf16 %v455_v30, %v454_v29 }
 0x18d   :  { %551 = vmatmul.bf16.gmra.mxu3 %v459_v31 }
 0x1e0   :  { %v537_v50 = vpop.f32.mrf.mxu3 }
 0x1e1   :  { %v538_v52 = vadd.f32 %v1038_v51, %v537_v50 }
 0x1e3   :  { %v557_v55 = vmax.f32 %v538_v52, 0.0 }
 0x1e8   :  { %v539_v53 = vpop.f32.mrf.mxu3 }
 0x1e9   :  { %v540_v54 = vadd.f32 %v1038_v51, %v539_v53 }
 0x1eb   :  { %v558_v56 = vmax.f32 %v540_v54, 0.0 }
 0x1ed   :  { %v565_v57 = vpack.c.bf16 %v558_v56, %v557_v55 }
 0x1ef   :  { %679 = vmatmul.bf16.vlgmr.msrb.gmra.mxu0 %v565_v57  ;;  %708 = vmatmul.bf16.vlgmr.msrb.gmra.mxu1 %v565_v57 }
 0x1f0   :  { %v542_v58 = vpop.f32.mrf.mxu3 }
 0x1f1   :  { %v543_v59 = vadd.f32 %v1038_v51, %v542_v58 }
 0x1f3   :  { %v559_v62 = vmax.f32 %v543_v59, 0.0 }
 0x1f8   :  { %v544_v60 = vpop.f32.mrf.mxu3 }
 0x1f9   :  { %v545_v61 = vadd.f32 %v1038_v51, %v544_v60 }
 0x1fb   :  { %v560_v63 = vmax.f32 %v545_v61, 0.0 }
 0x1fd   :  { %v566_v0 = vpack.c.bf16 %v560_v63, %v559_v62 }
 0x1ff   :  { %684 = vmatmul.bf16.gmra.mxu0 %v566_v0  ;;  %713 = vmatmul.bf16.gmra.mxu1 %v566_v0 }
 0x200   :  { %v547_v1 = vpop.f32.mrf.mxu3 }
 0x201   :  { %v548_v2 = vadd.f32 %v1038_v51, %v547_v1 }
 0x203   :  { %v561_v5 = vmax.f32 %v548_v2, 0.0 }
 0x208   :  { %v549_v3 = vpop.f32.mrf.mxu3 }
 0x209   :  { %v550_v4 = vadd.f32 %v1038_v51, %v549_v3 }
 0x20b   :  { %v562_v6 = vmax.f32 %v550_v4, 0.0 }
 0x20d   :  { %v567_v7 = vpack.c.bf16 %v562_v6, %v561_v5 }
 0x20f   :  { %689 = vmatmul.bf16.gmra.mxu0 %v567_v7  ;;  %718 = vmatmul.bf16.gmra.mxu1 %v567_v7 }
 0x210   :  { %v552_v8 = vpop.f32.mrf.mxu3 }
 0x211   :  { %v553_v9 = vadd.f32 %v1038_v51, %v552_v8 }
 0x213   :  { %v563_v12 = vmax.f32 %v553_v9, 0.0 }
 0x218   :  { %v554_v10 = vpop.f32.mrf.mxu3 }
 0x219   :  { %v555_v11 = vadd.f32 %v1038_v51, %v554_v10 }
 0x21b   :  { %v564_v13 = vmax.f32 %v555_v11, 0.0 }
 0x21d   :  { %v568_v14 = vpack.c.bf16 %v564_v13, %v563_v12 }
 0x21f   :  { %694 = vmatmul.bf16.gmra.mxu0 %v568_v14  ;;  %723 = vmatmul.bf16.gmra.mxu1 %v568_v14 }
 0x26c   :  { %v680_v18 = vpop.f32.mrf.mxu0  ;;  %v709_v19 = vpop.f32.mrf.mxu1 }
 0x26d   :  { %v681_v20 = vadd.f32 %v680_v18, %v587_v16  ;;  %v710_v21 = vadd.f32 %v709_v19, %v588_v17 }
 0x26f   :  { %729 = vst [vmem:[#allocation13] sm:$0xff] %v681_v20 }
 0x270   :  { %730 = vst [vmem:[#allocation13 + $0x8] sm:$0xff] %v710_v21 }
 0x274   :  { %v682_v22 = vpop.f32.mrf.mxu0  ;;  %v711_v23 = vpop.f32.mrf.mxu1 }
 0x275   :  { %v683_v24 = vadd.f32 %v682_v22, %v587_v16  ;;  %v712_v25 = vadd.f32 %v711_v23, %v588_v17 }
 0x277   :  { %731 = vst [vmem:[#allocation13 + $0x10] sm:$0xff] %v683_v24 }
 0x278   :  { %732 = vst [vmem:[#allocation13 + $0x18] sm:$0xff] %v712_v25 }
 0x27c   :  { %v685_v26 = vpop.f32.mrf.mxu0  ;;  %v714_v27 = vpop.f32.mrf.mxu1 }
 0x27d   :  { %v686_v28 = vadd.f32 %v685_v26, %v587_v16  ;;  %v715_v29 = vadd.f32 %v714_v27, %v588_v17 }
 0x27f   :  { %733 = vst [vmem:[#allocation13 + $0x20] sm:$0xff] %v686_v28 }
 0x280   :  { %734 = vst [vmem:[#allocation13 + $0x28] sm:$0xff] %v715_v29 }
 0x284   :  { %v687_v30 = vpop.f32.mrf.mxu0  ;;  %v716_v31 = vpop.f32.mrf.mxu1 }
 0x285   :  { %v688_v32 = vadd.f32 %v687_v30, %v587_v16  ;;  %v717_v33 = vadd.f32 %v716_v31, %v588_v17 }
 0x287   :  { %735 = vst [vmem:[#allocation13 + $0x30] sm:$0xff] %v688_v32 }
 0x288   :  { %736 = vst [vmem:[#allocation13 + $0x38] sm:$0xff] %v717_v33 }
 0x28c   :  { %v690_v34 = vpop.f32.mrf.mxu0  ;;  %v719_v35 = vpop.f32.mrf.mxu1 }
 0x28d   :  { %v691_v36 = vadd.f32 %v690_v34, %v587_v16  ;;  %v720_v37 = vadd.f32 %v719_v35, %v588_v17 }
 0x28f   :  { %737 = vst [vmem:[#allocation13 + $0x40] sm:$0xff] %v691_v36 }
 0x290   :  { %738 = vst [vmem:[#allocation13 + $0x48] sm:$0xff] %v720_v37 }
 0x294   :  { %v692_v39 = vpop.f32.mrf.mxu0  ;;  %v721_v40 = vpop.f32.mrf.mxu1 }
 0x295   :  { %v693_v41 = vadd.f32 %v692_v39, %v587_v16  ;;  %v722_v42 = vadd.f32 %v721_v40, %v588_v17 }
 0x297   :  { %739 = vst [vmem:[#allocation13 + $0x50] sm:$0xff] %v693_v41 }
 0x298   :  { %740 = vst [vmem:[#allocation13 + $0x58] sm:$0xff] %v722_v42 }
 0x29c   :  { %v695_v43 = vpop.f32.mrf.mxu0  ;;  %v724_v44 = vpop.f32.mrf.mxu1 }
 0x29d   :  { %v696_v38 = vadd.f32 %v695_v43, %v587_v16  ;;  %v725_v45 = vadd.f32 %v724_v44, %v588_v17 }
 0x29f   :  { %741 = vst [vmem:[#allocation13 + $0x60] sm:$0xff] %v696_v38 }
 0x2a0   :  { %742 = vst [vmem:[#allocation13 + $0x68] sm:$0xff] %v725_v45 }
 0x2a4   :  { %v697_v46 = vpop.f32.mrf.mxu0  ;;  %v726_v47 = vpop.f32.mrf.mxu1 }
 0x2a5   :  { %v698_v48 = vadd.f32 %v697_v46, %v587_v16  ;;  %v727_v49 = vadd.f32 %v726_v47, %v588_v17 }
 0x2a7   :  { %743 = vst [vmem:[#allocation13 + $0x70] sm:$0xff] %v698_v48 }
 0x2a8   :  { %744 = vst [vmem:[#allocation13 + $0x78] sm:$0xff] %v727_v49 }
 0x2a9   :  { %757 = dma.vmem_to_hbm [thread:$0]  %s750_s1, 2048, %s752_s24, [#allocation4], %s1222_s27, %s1222_s27, %s1223_s28  }
 0x2aa   :  { %1215 = dma.done.wait [#allocation4], 2048  }
 0x2ab   :  { %1216 = vsyncadd [#allocation4], 4294965248 }
 0x2ac   :  { %762 = vsyncpa [#allocation3], 1 }
 0x2ad   :  { %763 = vsyncpa [#allocation6], 1 }
 0x2ae   :  { %764 = vsyncpa [#allocation9], 1 }
 0x2af   :  { %765 = vsyncpa [#allocation12], 1 }
 0x2b0   :  { %766 = vsyncpa [#allocation4], 1 }

// kernel: tpu_custom_call.1
= control target key start
LH: loop header
LB: loop body
LE: loop exit
PB: predicated region body
PF: predicated region fallthrough
CT: control target
= control target key end

     0   :  { %14 = vsyncpa [#allocation3], 0  ;;  %s1335_s0 = inlined_call_operand.hbm [shape: f32[64,256], index: 0, kind: input, shape index: {}]   ;;  %s1336_s1 = inlined_call_operand.hbm [shape: bf16[256,128], index: 1, kind: input, shape index: {}]   ;;  %s1337_s2 = inlined_call_operand.vmem [shape: f32[1,128], index: 2, kind: input, shape index: {}]   ;;  %s1338_s3 = inlined_call_operand.hbm [shape: bf16[128,128], index: 3, kind: input, shape index: {}]   ;;  %s1339_s4 = inlined_call_operand.hbm [shape: f32[1,128], index: 4, kind: input, shape index: {}]   ;;  %s1340_s5 = inlined_call_operand.hbm [shape: bf16[128,128], index: 5, kind: input, shape index: {}]   ;;  %s1341_s6 = inlined_call_operand.vmem [shape: f32[1,128], index: 6, kind: input, shape index: {}]   ;;  %s1342_s7 = inlined_call_operand.hbm [shape: bf16[128,256], index: 7, kind: input, shape index: {}]   ;;  %s1343_s8 = inlined_call_operand.vmem [shape: f32[1,256], index: 8, kind: input, shape index: {}]   ;;  %s1344_s9 = inlined_call_operand.hbm [shape: f32[64,256], index: 9, kind: output, shape index: {}]  }
   0x1   :  { %15 = vsyncpa [#allocation6], 0 }
   0x2   :  { %16 = vsyncpa [#allocation9], 0 }
   0x3   :  { %17 = vsyncpa [#allocation12], 0  ;;  %s36_s11 = sshll.u32 %s1336_s1, 4  ;;  %s37_s11 = int_to_ptr.hbm [resolvable:$true] %s36_s11 }
   0x4   :  { %18 = vsyncpa [#allocation4], 0  ;;  %s1217_s12 = smov [#allocation5]   ;;  %s65_s16 = sshll.u32 %s1339_s4, 4  ;;  %s66_s16 = int_to_ptr.hbm [resolvable:$true] %s65_s16 }
   0x5   :  { %s38_s13 = sshll.u32 %s1217_s12, 4  ;;  %s1218_s17 = smov 64   ;;  %s39_s13 = int_to_ptr.vmem [resolvable:$true] %s38_s13 }
   0x6   :  { %s1219_s18 = smov 4   ;;  %s1220_s19 = smov [#allocation8]  }
   0x7   :  { %44 = dma.hbm_to_vmem [thread:$0]  %s37_s11, 2048, %s39_s13, [#allocation6], %s1218_s17, %s1218_s17, %s1219_s18  }
   0x8   :  { %s67_s20 = sshll.u32 %s1220_s19, 4  ;;  %s23_s22 = sshll.u32 %s1335_s0, 4  ;;  %s68_s20 = int_to_ptr.vmem [resolvable:$true] %s67_s20  ;;  %s24_s22 = int_to_ptr.hbm [resolvable:$true] %s23_s22 }
   0x9   :  { %70 = dma.hbm_to_vmem [thread:$0]  %s66_s16, 16, %s68_s20, [#allocation9]  }
   0xa   :  { %s1221_s23 = smov [#allocation2]   ;;  %s51_s26 = sshll.u32 %s1338_s3, 4  ;;  %s52_s26 = int_to_ptr.hbm [resolvable:$true] %s51_s26 }
   0xb   :  { %s25_s24 = sshll.u32 %s1221_s23, 4  ;;  %s1222_s27 = smov 256   ;;  %s26_s24 = int_to_ptr.vmem [resolvable:$true] %s25_s24 }
   0xc   :  { %s1223_s28 = smov 16   ;;  %s1224_s29 = smov [#allocation7]  }
   0xd   :  { %31 = dma.hbm_to_vmem [thread:$0]  %s24_s22, 2048, %s26_s24, [#allocation3], %s1222_s27, %s1222_s27, %s1223_s28  }
   0xe   :  { %s53_s30 = sshll.u32 %s1224_s29, 4  ;;  %s75_s11 = sshll.u32 %s1340_s5, 4  ;;  %s54_s30 = int_to_ptr.vmem [resolvable:$true] %s53_s30  ;;  %s76_s11 = int_to_ptr.hbm [resolvable:$true] %s75_s11 }
   0xf   :  { %59 = dma.hbm_to_vmem [thread:$0]  %s52_s26, 1024, %s54_s30, [#allocation6], %s1218_s17, %s1218_s17, %s1219_s18  }
  0x10   :  { %s90_s13 = sshll.u32 %s1342_s7, 4  ;;  %s1225_s14 = smov [#allocation10]   ;;  %s91_s13 = int_to_ptr.hbm [resolvable:$true] %s90_s13 }
  0x11   :  { %s77_s15 = sshll.u32 %s1225_s14, 4  ;;  %s1226_s16 = smov [#allocation11]   ;;  %s78_s15 = int_to_ptr.vmem [resolvable:$true] %s77_s15 }
  0x12   :  { %83 = dma.hbm_to_vmem [thread:$0]  %s76_s11, 1024, %s78_s15, [#allocation9], %s1218_s17, %s1218_s17, %s1219_s18  }
  0x13   :  { %s92_s5 = sshll.u32 %s1226_s16, 4  ;;  %s1227_s19 = smov 128   ;;  %s93_s5 = int_to_ptr.vmem [resolvable:$true] %s92_s5 }
  0x14   :  { %s1228_s20 = smov 8  }
  0x15   :  { %98 = dma.hbm_to_vmem [thread:$0]  %s91_s13, 2048, %s93_s5, [#allocation12], %s1227_s19, %s1227_s19, %s1228_s20  }
  0x16   :  { %1207 = dma.done.wait [#allocation3], 2048  }
  0x17   :  { %1208 = vsyncadd [#allocation3], 4294965248 }
  0x18   :  { %1209 = dma.done.wait [#allocation6], 3072  }
  0x19   :  { %1210 = vsyncadd [#allocation6], 4294964224 }
  0x1a   :  { %1211 = dma.done.wait [#allocation9], 1040  }
  0x1b   :  { %1212 = vsyncadd [#allocation9], 4294966256 }
  0x1c   :  { %1213 = dma.done.wait [#allocation12], 2048  }
  0x1d   :  { %1214 = vsyncadd [#allocation12], 4294965248  ;;  %v966_v0 = vld [vmem:[#allocation5 + $0x38] sm:$0xff]  ;;  %v965_v2 = vld [vmem:[#allocation5 + $0x30] sm:$0xff]  ;;  %s751_s24 = sshll.u32 %s1344_s9, 4  ;;  %s752_s24 = int_to_ptr.hbm [resolvable:$true] %s751_s24 }
  0x1e   :  { %v974_v1 = vld [vmem:[#allocation5 + $0x78] sm:$0xff]  ;;  %281 = vmatpush.bf16.msra.mxu0 %v966_v0  ;;  %v973_v3 = vld [vmem:[#allocation5 + $0x70] sm:$0xff]  ;;  %1007 = vmatpush.bf16.msra.mxu2 %v966_v0  ;;  %v964_v4 = vld [vmem:[#allocation5 + $0x28] sm:$0xff] }
  0x1f   :  { %310 = vmatpush.bf16.msra.mxu1 %v974_v1  ;;  %1015 = vmatpush.bf16.msra.mxu3 %v974_v1  ;;  %v972_v5 = vld [vmem:[#allocation5 + $0x68] sm:$0xff]  ;;  %v963_v6 = vld [vmem:[#allocation5 + $0x20] sm:$0xff]  ;;  %v962_v8 = vld [vmem:[#allocation5 + $0x18] sm:$0xff] }
  0x20   :  { %v971_v7 = vld [vmem:[#allocation5 + $0x60] sm:$0xff]  ;;  %v970_v9 = vld [vmem:[#allocation5 + $0x58] sm:$0xff]  ;;  %v961_v10 = vld [vmem:[#allocation5 + $0x10] sm:$0xff] }
  0x21   :  { %v969_v11 = vld [vmem:[#allocation5 + $0x50] sm:$0xff]  ;;  %v960_v12 = vld [vmem:[#allocation5 + $0x8] sm:$0xff]  ;;  %v959_v14 = vld [vmem:[#allocation5] sm:$0xff] }
  0x22   :  { %282 = vmatpush.bf16.msra.mxu0 %v965_v2  ;;  %1008 = vmatpush.bf16.msra.mxu2 %v965_v2  ;;  %v968_v13 = vld [vmem:[#allocation5 + $0x48] sm:$0xff]  ;;  %v967_v15 = vld [vmem:[#allocation5 + $0x40] sm:$0xff]  ;;  %v127_v17 = vld [vmem:[#allocation2 + $0x10] sm:$0xff] }
  0x23   :  { %311 = vmatpush.bf16.msra.mxu1 %v973_v3  ;;  %1016 = vmatpush.bf16.msra.mxu3 %v973_v3  ;;  %v125_v16 = vld [vmem:[#allocation2] sm:$0xff]  ;;  %v126_v18 = vld [vmem:[#allocation2 + $0x8] sm:$0xff]  ;;  %v128_v19 = vld [vmem:[#allocation2 + $0x18] sm:$0xff] }
  0x24   :  { %v133_v20 = vld [vmem:[#allocation2 + $0x40] sm:$0xff]  ;;  %v135_v21 = vld [vmem:[#allocation2 + $0x50] sm:$0xff]  ;;  %v134_v22 = vld [vmem:[#allocation2 + $0x48] sm:$0xff]  ;;  %v141_v25 = vpack.c.bf16 %v127_v17, %v125_v16  ;;  %v142_v26 = vpack.c.bf16 %v128_v19, %v126_v18 }
  0x25   :  { %v136_v23 = vld [vmem:[#allocation2 + $0x58] sm:$0xff]  ;;  %v145_v27 = vpack.c.bf16 %v135_v21, %v133_v20  ;;  %v981_v29 = vld [vmem:[#allocation7 + $0x30] sm:$0xff]  ;;  %v980_v30 = vld [vmem:[#allocation7 + $0x28] sm:$0xff] }
  0x26   :  { %283 = vmatpush.bf16.msra.mxu0 %v964_v4  ;;  %1009 = vmatpush.bf16.msra.mxu2 %v964_v4  ;;  %v982_v24 = vld [vmem:[#allocation7 + $0x38] sm:$0xff]  ;;  %v146_v28 = vpack.c.bf16 %v136_v23, %v134_v22  ;;  %v979_v31 = vld [vmem:[#allocation7 + $0x20] sm:$0xff]  ;;  %v131_v33 = vld [vmem:[#allocation2 + $0x30] sm:$0xff] }
  0x27   :  { %312 = vmatpush.bf16.msra.mxu1 %v972_v5  ;;  %1017 = vmatpush.bf16.msra.mxu3 %v972_v5  ;;  %v129_v32 = vld [vmem:[#allocation2 + $0x20] sm:$0xff]  ;;  %v130_v34 = vld [vmem:[#allocation2 + $0x28] sm:$0xff]  ;;  %v132_v35 = vld [vmem:[#allocation2 + $0x38] sm:$0xff] }
  0x28   :  { %v137_v36 = vld [vmem:[#allocation2 + $0x60] sm:$0xff]  ;;  %v139_v37 = vld [vmem:[#allocation2 + $0x70] sm:$0xff]  ;;  %v138_v38 = vld [vmem:[#allocation2 + $0x68] sm:$0xff]  ;;  %v143_v40 = vpack.c.bf16 %v131_v33, %v129_v32  ;;  %v144_v41 = vpack.c.bf16 %v132_v35, %v130_v34 }
  0x29   :  { %v140_v39 = vld [vmem:[#allocation2 + $0x78] sm:$0xff]  ;;  %v147_v42 = vpack.c.bf16 %v139_v37, %v137_v36  ;;  %v977_v45 = vld [vmem:[#allocation7 + $0x10] sm:$0xff]  ;;  %v976_v46 = vld [vmem:[#allocation7 + $0x8] sm:$0xff] }
  0x2a   :  { %284 = vmatpush.bf16.msra.mxu0 %v963_v6  ;;  %1010 = vmatpush.bf16.msra.mxu2 %v963_v6  ;;  %v148_v43 = vpack.c.bf16 %v140_v39, %v138_v38  ;;  %v978_v44 = vld [vmem:[#allocation7 + $0x18] sm:$0xff]  ;;  %v975_v47 = vld [vmem:[#allocation7] sm:$0xff]  ;;  %v988_v18 = vld [vmem:[#allocation10 + $0x28] sm:$0xff] }
  0x2b   :  { %313 = vmatpush.bf16.msra.mxu1 %v971_v7  ;;  %1018 = vmatpush.bf16.msra.mxu3 %v971_v7  ;;  %v1036_v50 = vld [vmem:[%s1337_s2] ss:$0 sm:$0xff]  ;;  %v987_v22 = vld [vmem:[#allocation10 + $0x20] sm:$0xff]  ;;  %v985_v34 = vld [vmem:[#allocation10 + $0x10] sm:$0xff] }
  0x2c   :  { %v984_v35 = vld [vmem:[#allocation10 + $0x8] sm:$0xff]  ;;  %v983_v36 = vld [vmem:[#allocation10] sm:$0xff]  ;;  %v1313_v38 = vld [vmem:[#allocation8] ss:$0 sm:$0xff] }
  0x2e   :  { %285 = vmatpush.bf16.msra.mxu0 %v962_v8  ;;  %1011 = vmatpush.bf16.msra.mxu2 %v962_v8 }
  0x2f   :  { %314 = vmatpush.bf16.msra.mxu1 %v970_v9  ;;  %1019 = vmatpush.bf16.msra.mxu3 %v970_v9 }
  0x32   :  { %286 = vmatpush.bf16.msra.mxu0 %v961_v10  ;;  %1012 = vmatpush.bf16.msra.mxu2 %v961_v10 }
  0x33   :  { %315 = vmatpush.bf16.msra.mxu1 %v969_v11  ;;  %1020 = vmatpush.bf16.msra.mxu3 %v969_v11  ;;  %v990_v11 = vld [vmem:[#allocation10 + $0x38] sm:$0xff] }
  0x36   :  { %287 = vmatpush.bf16.msra.mxu0 %v960_v12  ;;  %1013 = vmatpush.bf16.msra.mxu2 %v960_v12 }
  0x37   :  { %316 = vmatpush.bf16.msra.mxu1 %v968_v13  ;;  %1021 = vmatpush.bf16.msra.mxu3 %v968_v13 }
  0x3a   :  { %288 = vmatpush.bf16.msra.mxu0 %v959_v14  ;;  %1014 = vmatpush.bf16.msra.mxu2 %v959_v14  ;;  %v989_v14 = vld [vmem:[#allocation10 + $0x30] sm:$0xff] }
  0x3b   :  { %317 = vmatpush.bf16.msra.mxu1 %v967_v15  ;;  %1022 = vmatpush.bf16.msra.mxu3 %v967_v15 }
  0x3d   :  { %289 = vmatmul.bf16.vlgmr.msra.gmra.mxu0 %v141_v25  ;;  %299 = vmatmul.bf16.vlgmr.msra.gmra.mxu2 %v145_v27 }
  0x3e   :  { %419 = vmatpush.bf16.msrb.mxu2 %v982_v24  ;;  %318 = vmatmul.bf16.vlgmr.msra.gmra.mxu1 %v142_v26  ;;  %v986_v24 = vld [vmem:[#allocation10 + $0x18] sm:$0xff] }
  0x3f   :  { %328 = vmatmul.bf16.vlgmr.msra.gmra.mxu3 %v146_v28 }
  0x40   :  { %528 = vmatpush.bf16.msrb.mxu3 %v990_v11  ;;  %v999_v11 = vld [vmem:[#allocation11 + $0x44] sm:$0xf] }
  0x42   :  { %420 = vmatpush.bf16.msrb.mxu2 %v981_v29 }
  0x44   :  { %529 = vmatpush.bf16.msrb.mxu3 %v989_v14 }
  0x46   :  { %421 = vmatpush.bf16.msrb.mxu2 %v980_v30 }
  0x48   :  { %530 = vmatpush.bf16.msrb.mxu3 %v988_v18  ;;  %v921_v18 = vld [vmem:[#allocation11 + $0x30] sm:$0xf] }
  0x4a   :  { %422 = vmatpush.bf16.msrb.mxu2 %v979_v31 }
  0x4c   :  { %531 = vmatpush.bf16.msrb.mxu3 %v987_v22 }
  0x4d   :  { %294 = vmatmul.bf16.gmra.mxu0 %v143_v40  ;;  %304 = vmatmul.bf16.gmra.mxu2 %v147_v42 }
  0x4e   :  { %323 = vmatmul.bf16.gmra.mxu1 %v144_v41  ;;  %423 = vmatpush.bf16.msrb.mxu2 %v978_v44 }
  0x4f   :  { %333 = vmatmul.bf16.gmra.mxu3 %v148_v43 }
  0x50   :  { %532 = vmatpush.bf16.msrb.mxu3 %v986_v24 }
  0x52   :  { %424 = vmatpush.bf16.msrb.mxu2 %v977_v45 }
  0x54   :  { %533 = vmatpush.bf16.msrb.mxu3 %v985_v34  ;;  %v995_v34 = vld [vmem:[#allocation11 + $0x24] sm:$0xf] }
  0x56   :  { %425 = vmatpush.bf16.msrb.mxu2 %v976_v46 }
  0x58   :  { %534 = vmatpush.bf16.msrb.mxu3 %v984_v35 }
  0x5a   :  { %426 = vmatpush.bf16.msrb.mxu2 %v975_v47 }
  0x5c   :  { %535 = vmatpush.bf16.msrb.mxu3 %v983_v36  ;;  %v915_v36 = vld [vmem:[#allocation11 + $0x28] sm:$0xf0] }
  0xba   :  { %v290_v48 = vpop.f32.mrf.mxu0 }
  0xbb   :  { %v319_v49 = vpop.f32.mrf.mxu1  ;;  %v291_v51 = vadd.f32 %v1036_v50, %v290_v48 }
  0xbd   :  { %v320_v54 = vadd.f32 %v319_v49, %v291_v51 }
  0xbf   :  { %v339_v57 = vmax.f32 %v320_v54, 0.0  ;;  %v1005_v54 = vld [vmem:[#allocation11 + $0x74] sm:$0xf] }
  0xc0   :  { %v300_v62 = vpop.f32.mrf.mxu2 }
  0xc1   :  { %v301_v12 = vadd.f32 %v1036_v50, %v300_v62  ;;  %v947_v62 = vld [vmem:[#allocation11 + $0x68] sm:$0xf0] }
  0xc2   :  { %v292_v52 = vpop.f32.mrf.mxu0  ;;  %v329_v0 = vpop.f32.mrf.mxu3 }
  0xc3   :  { %v321_v53 = vpop.f32.mrf.mxu1  ;;  %v293_v55 = vadd.f32 %v1036_v50, %v292_v52  ;;  %v330_v16 = vadd.f32 %v329_v0, %v301_v12  ;;  %v953_v52 = vld [vmem:[#allocation11 + $0x70] sm:$0xf]  ;;  %v931_v12 = vld [vmem:[#allocation11 + $0x48] sm:$0xf0] }
  0xc5   :  { %v322_v56 = vadd.f32 %v321_v53, %v293_v55  ;;  %v343_v20 = vmax.f32 %v330_v16, 0.0  ;;  %v1006_v53 = vld [vmem:[#allocation11 + $0x74] sm:$0xf0] }
  0xc7   :  { %v340_v58 = vmax.f32 %v322_v56, 0.0  ;;  %v954_v56 = vor.u32 %v1006_v53, %v953_v52 }
  0xc8   :  { %v302_v6 = vpop.f32.mrf.mxu2 }
  0xc9   :  { %v347_v59 = vpack.c.bf16 %v340_v58, %v339_v57  ;;  %v303_v13 = vadd.f32 %v1036_v50, %v302_v6  ;;  %v955_v57 = vld [vmem:[#allocation11 + $0x78] sm:$0xf0]  ;;  %v945_v58 = vld [vmem:[#allocation11 + $0x60] sm:$0xf]  ;;  %671 = vmatpush.bf16.msrb.mxu0 %v954_v56 }
  0xca   :  { %v295_v60 = vpop.f32.mrf.mxu0  ;;  %v331_v10 = vpop.f32.mrf.mxu3 }
  0xcb   :  { %v324_v61 = vpop.f32.mrf.mxu1  ;;  %427 = vmatmul.bf16.vlgmr.msrb.gmra.mxu2 %v347_v59  ;;  %v296_v63 = vadd.f32 %v1036_v50, %v295_v60  ;;  %v332_v17 = vadd.f32 %v331_v10, %v303_v13  ;;  %v1004_v59 = vld [vmem:[#allocation11 + $0x64] sm:$0xf0]  ;;  %v958_v60 = vor.u32 %v1005_v54, %v955_v57 }
  0xcd   :  { %v325_v2 = vadd.f32 %v324_v61, %v296_v63  ;;  %v344_v21 = vmax.f32 %v332_v17, 0.0  ;;  %v1003_v61 = vld [vmem:[#allocation11 + $0x64] sm:$0xf]  ;;  %v946_v63 = vor.u32 %v1004_v59, %v945_v58  ;;  %700 = vmatpush.bf16.msrb.mxu1 %v958_v60  ;;  %v934_v17 = vor.u32 %v999_v11, %v931_v12 }
  0xce   :  { %v950_v0 = vor.u32 %v1003_v61, %v947_v62 }
  0xcf   :  { %v341_v7 = vmax.f32 %v325_v2, 0.0  ;;  %v349_v23 = vpack.c.bf16 %v344_v21, %v343_v20  ;;  %v1002_v2 = vld [vmem:[#allocation11 + $0x54] sm:$0xf0]  ;;  %672 = vmatpush.bf16.msrb.mxu0 %v946_v63  ;;  %v997_v20 = vld [vmem:[#allocation11 + $0x34] sm:$0xf] }
  0xd0   :  { %v305_v15 = vpop.f32.mrf.mxu2  ;;  %v923_v21 = vld [vmem:[#allocation11 + $0x38] sm:$0xf0] }
  0xd1   :  { %v306_v26 = vadd.f32 %v1036_v50, %v305_v15  ;;  %701 = vmatpush.bf16.msrb.mxu1 %v950_v0  ;;  %v926_v24 = vor.u32 %v997_v20, %v923_v21 }
  0xd2   :  { %v297_v1 = vpop.f32.mrf.mxu0  ;;  %v334_v19 = vpop.f32.mrf.mxu3 }
  0xd3   :  { %v298_v3 = vadd.f32 %v1036_v50, %v297_v1  ;;  %v326_v4 = vpop.f32.mrf.mxu1  ;;  %v335_v29 = vadd.f32 %v334_v19, %v306_v26  ;;  %v937_v1 = vld [vmem:[#allocation11 + $0x50] sm:$0xf]  ;;  %v998_v19 = vld [vmem:[#allocation11 + $0x34] sm:$0xf0] }
  0xd5   :  { %v327_v5 = vadd.f32 %v326_v4, %v298_v3  ;;  %v345_v31 = vmax.f32 %v335_v29, 0.0  ;;  %v1001_v3 = vld [vmem:[#allocation11 + $0x54] sm:$0xf]  ;;  %v939_v4 = vld [vmem:[#allocation11 + $0x58] sm:$0xf0] }
  0xd7   :  { %v342_v8 = vmax.f32 %v327_v5, 0.0  ;;  %v938_v5 = vor.u32 %v1002_v2, %v937_v1 }
  0xd8   :  { %v307_v25 = vpop.f32.mrf.mxu2 }
  0xd9   :  { %v348_v9 = vpack.c.bf16 %v342_v8, %v341_v7  ;;  %v308_v27 = vadd.f32 %v1036_v50, %v307_v25  ;;  %v942_v7 = vor.u32 %v1001_v3, %v939_v4  ;;  %v929_v8 = vld [vmem:[#allocation11 + $0x40] sm:$0xf]  ;;  %673 = vmatpush.bf16.msrb.mxu0 %v938_v5 }
  0xda   :  { %v336_v28 = vpop.f32.mrf.mxu3 }
  0xdb   :  { %432 = vmatmul.bf16.gmra.mxu2 %v348_v9  ;;  %v337_v30 = vadd.f32 %v336_v28, %v308_v27  ;;  %v1000_v9 = vld [vmem:[#allocation11 + $0x44] sm:$0xf0]  ;;  %702 = vmatpush.bf16.msrb.mxu1 %v942_v7 }
  0xdc   :  { %v930_v14 = vor.u32 %v1000_v9, %v929_v8 }
  0xdd   :  { %v346_v32 = vmax.f32 %v337_v30, 0.0 }
  0xde   :  { %674 = vmatpush.bf16.msrb.mxu0 %v930_v14 }
  0xdf   :  { %v350_v33 = vpack.c.bf16 %v346_v32, %v345_v31  ;;  %703 = vmatpush.bf16.msrb.mxu1 %v934_v17  ;;  %v913_v32 = vld [vmem:[#allocation11 + $0x20] sm:$0xf] }
  0xe3   :  { %704 = vmatpush.bf16.msrb.mxu1 %v926_v24 }
  0xeb   :  { %437 = vmatmul.bf16.gmra.mxu2 %v349_v23  ;;  %v922_v23 = vor.u32 %v998_v19, %v921_v18 }
  0xed   :  { %675 = vmatpush.bf16.msrb.mxu0 %v922_v23 }
  0xfb   :  { %442 = vmatmul.bf16.gmra.mxu2 %v350_v33  ;;  %v996_v33 = vld [vmem:[#allocation11 + $0x24] sm:$0xf0] }
  0xfc   :  { %v914_v35 = vor.u32 %v996_v33, %v913_v32 }
  0xfe   :  { %676 = vmatpush.bf16.msrb.mxu0 %v914_v35 }
 0x14e   :  { %v428_v37 = vpop.f32.mrf.mxu2 }
 0x14f   :  { %v429_v39 = vadd.f32 %v1313_v38, %v428_v37  ;;  %v918_v37 = vor.u32 %v995_v34, %v915_v36 }
 0x151   :  { %v448_v42 = vmax.f32 %v429_v39, 0.0  ;;  %v905_v39 = vld [vmem:[#allocation11 + $0x10] sm:$0xf]  ;;  %705 = vmatpush.bf16.msrb.mxu1 %v918_v37 }
 0x156   :  { %v430_v40 = vpop.f32.mrf.mxu2 }
 0x157   :  { %v431_v41 = vadd.f32 %v1313_v38, %v430_v40  ;;  %v994_v40 = vld [vmem:[#allocation11 + $0x14] sm:$0xf0] }
 0x159   :  { %v449_v43 = vmax.f32 %v431_v41, 0.0  ;;  %v993_v41 = vld [vmem:[#allocation11 + $0x14] sm:$0xf] }
 0x15b   :  { %v456_v44 = vpack.c.bf16 %v449_v43, %v448_v42  ;;  %v906_v42 = vor.u32 %v994_v40, %v905_v39  ;;  %v907_v43 = vld [vmem:[#allocation11 + $0x18] sm:$0xf0] }
 0x15d   :  { %536 = vmatmul.bf16.vlgmr.msrb.gmra.mxu3 %v456_v44  ;;  %v910_v44 = vor.u32 %v993_v41, %v907_v43  ;;  %677 = vmatpush.bf16.msrb.mxu0 %v906_v42 }
 0x15e   :  { %v433_v45 = vpop.f32.mrf.mxu2 }
 0x15f   :  { %v434_v46 = vadd.f32 %v1313_v38, %v433_v45  ;;  %706 = vmatpush.bf16.msrb.mxu1 %v910_v44  ;;  %v992_v45 = vld [vmem:[#allocation11 + $0x4] sm:$0xf0] }
 0x161   :  { %v450_v49 = vmax.f32 %v434_v46, 0.0  ;;  %v991_v46 = vld [vmem:[#allocation11 + $0x4] sm:$0xf] }
 0x166   :  { %v435_v47 = vpop.f32.mrf.mxu2 }
 0x167   :  { %v436_v48 = vadd.f32 %v1313_v38, %v435_v47 }
 0x169   :  { %v451_v50 = vmax.f32 %v436_v48, 0.0  ;;  %v899_v48 = vld [vmem:[#allocation11 + $0x8] sm:$0xf0] }
 0x16b   :  { %v457_v51 = vpack.c.bf16 %v451_v50, %v450_v49  ;;  %v902_v49 = vor.u32 %v991_v46, %v899_v48 }
 0x16d   :  { %541 = vmatmul.bf16.gmra.mxu3 %v457_v51  ;;  %707 = vmatpush.bf16.msrb.mxu1 %v902_v49  ;;  %v1038_v51 = vld [vmem:[%s1341_s6] ss:$0 sm:$0xff] }
 0x16e   :  { %v438_v55 = vpop.f32.mrf.mxu2 }
 0x16f   :  { %v439_v6 = vadd.f32 %v1313_v38, %v438_v55 }
 0x171   :  { %v452_v15 = vmax.f32 %v439_v6, 0.0 }
 0x176   :  { %v440_v10 = vpop.f32.mrf.mxu2 }
 0x177   :  { %v441_v13 = vadd.f32 %v1313_v38, %v440_v10 }
 0x179   :  { %v453_v16 = vmax.f32 %v441_v13, 0.0 }
 0x17b   :  { %v458_v22 = vpack.c.bf16 %v453_v16, %v452_v15  ;;  %v585_v15 = vld [vmem:[%s1343_s8] sm:$0x3]  ;;  %s1229_s8 = smov [#allocation13]  }
 0x17c   :  { %v587_v16 = vperm.slane %v585_v15, 0  ;;  %v588_v17 = vperm.slane %v585_v15, 1  ;;  %s749_s1 = sshll.u32 %s1229_s8, 4  ;;  %s750_s1 = int_to_ptr.vmem [resolvable:$true] %s749_s1 }
 0x17d   :  { %546 = vmatmul.bf16.gmra.mxu3 %v458_v22 }
 0x17e   :  { %v443_v25 = vpop.f32.mrf.mxu2 }
 0x17f   :  { %v444_v26 = vadd.f32 %v1313_v38, %v443_v25 }
 0x181   :  { %v454_v29 = vmax.f32 %v444_v26, 0.0 }
 0x186   :  { %v445_v27 = vpop.f32.mrf.mxu2 }
 0x187   :  { %v446_v28 = vadd.f32 %v1313_v38, %v445_v27  ;;  %v897_v38 = vld [vmem:[#allocation11] sm:$0xf] }
 0x188   :  { %v898_v47 = vor.u32 %v992_v45, %v897_v38 }
 0x189   :  { %v455_v30 = vmax.f32 %v446_v28, 0.0 }
 0x18a   :  { %678 = vmatpush.bf16.msrb.mxu0 %v898_v47 }
 0x18b   :  { %v459_v31 = vpack.c.bf16 %v455_v30, %v454_v29 }
 0x18d   :  { %551 = vmatmul.bf16.gmra.mxu3 %v459_v31 }
 0x1e0   :  { %v537_v50 = vpop.f32.mrf.mxu3 }
 0x1e1   :  { %v538_v52 = vadd.f32 %v1038_v51, %v537_v50 }
 0x1e3   :  { %v557_v55 = vmax.f32 %v538_v52, 0.0 }
 0x1e8   :  { %v539_v53 = vpop.f32.mrf.mxu3 }
 0x1e9   :  { %v540_v54 = vadd.f32 %v1038_v51, %v539_v53 }
 0x1eb   :  { %v558_v56 = vmax.f32 %v540_v54, 0.0 }
 0x1ed   :  { %v565_v57 = vpack.c.bf16 %v558_v56, %v557_v55 }
 0x1ef   :  { %679 = vmatmul.bf16.vlgmr.msrb.gmra.mxu0 %v565_v57  ;;  %708 = vmatmul.bf16.vlgmr.msrb.gmra.mxu1 %v565_v57 }
 0x1f0   :  { %v542_v58 = vpop.f32.mrf.mxu3 }
 0x1f1   :  { %v543_v59 = vadd.f32 %v1038_v51, %v542_v58 }
 0x1f3   :  { %v559_v62 = vmax.f32 %v543_v59, 0.0 }
 0x1f8   :  { %v544_v60 = vpop.f32.mrf.mxu3 }
 0x1f9   :  { %v545_v61 = vadd.f32 %v1038_v51, %v544_v60 }
 0x1fb   :  { %v560_v63 = vmax.f32 %v545_v61, 0.0 }
 0x1fd   :  { %v566_v0 = vpack.c.bf16 %v560_v63, %v559_v62 }
 0x1ff   :  { %684 = vmatmul.bf16.gmra.mxu0 %v566_v0  ;;  %713 = vmatmul.bf16.gmra.mxu1 %v566_v0 }
 0x200   :  { %v547_v1 = vpop.f32.mrf.mxu3 }
 0x201   :  { %v548_v2 = vadd.f32 %v1038_v51, %v547_v1 }
 0x203   :  { %v561_v5 = vmax.f32 %v548_v2, 0.0 }
 0x208   :  { %v549_v3 = vpop.f32.mrf.mxu3 }
 0x209   :  { %v550_v4 = vadd.f32 %v1038_v51, %v549_v3 }
 0x20b   :  { %v562_v6 = vmax.f32 %v550_v4, 0.0 }
 0x20d   :  { %v567_v7 = vpack.c.bf16 %v562_v6, %v561_v5 }
 0x20f   :  { %689 = vmatmul.bf16.gmra.mxu0 %v567_v7  ;;  %718 = vmatmul.bf16.gmra.mxu1 %v567_v7 }
 0x210   :  { %v552_v8 = vpop.f32.mrf.mxu3 }
 0x211   :  { %v553_v9 = vadd.f32 %v1038_v51, %v552_v8 }
 0x213   :  { %v563_v12 = vmax.f32 %v553_v9, 0.0 }
 0x218   :  { %v554_v10 = vpop.f32.mrf.mxu3 }
 0x219   :  { %v555_v11 = vadd.f32 %v1038_v51, %v554_v10 }
 0x21b   :  { %v564_v13 = vmax.f32 %v555_v11, 0.0 }
 0x21d   :  { %v568_v14 = vpack.c.bf16 %v564_v13, %v563_v12 }
 0x21f   :  { %694 = vmatmul.bf16.gmra.mxu0 %v568_v14  ;;  %723 = vmatmul.bf16.gmra.mxu1 %v568_v14 }
 0x26c   :  { %v680_v18 = vpop.f32.mrf.mxu0  ;;  %v709_v19 = vpop.f32.mrf.mxu1 }
 0x26d   :  { %v681_v20 = vadd.f32 %v680_v18, %v587_v16  ;;  %v710_v21 = vadd.f32 %v709_v19, %v588_v17 }
 0x26f   :  { %729 = vst [vmem:[#allocation13] sm:$0xff] %v681_v20 }
 0x270   :  { %730 = vst [vmem:[#allocation13 + $0x8] sm:$0xff] %v710_v21 }
 0x274   :  { %v682_v22 = vpop.f32.mrf.mxu0  ;;  %v711_v23 = vpop.f32.mrf.mxu1 }
 0x275   :  { %v683_v24 = vadd.f32 %v682_v22, %v587_v16  ;;  %v712_v25 = vadd.f32 %v711_v23, %v588_v17 }
 0x277   :  { %731 = vst [vmem:[#allocation13 + $0x10] sm:$0xff] %v683_v24 }
 0x278   :  { %732 = vst [vmem:[#allocation13 + $0x18] sm:$0xff] %v712_v25 }
 0x27c   :  { %v685_v26 = vpop.f32.mrf.mxu0  ;;  %v714_v27 = vpop.f32.mrf.mxu1 }
 0x27d   :  { %v686_v28 = vadd.f32 %v685_v26, %v587_v16  ;;  %v715_v29 = vadd.f32 %v714_v27, %v588_v17 }
 0x27f   :  { %733 = vst [vmem:[#allocation13 + $0x20] sm:$0xff] %v686_v28 }
 0x280   :  { %734 = vst [vmem:[#allocation13 + $0x28] sm:$0xff] %v715_v29 }
 0x284   :  { %v687_v30 = vpop.f32.mrf.mxu0  ;;  %v716_v31 = vpop.f32.mrf.mxu1 }
 0x285   :  { %v688_v32 = vadd.f32 %v687_v30, %v587_v16  ;;  %v717_v33 = vadd.f32 %v716_v31, %v588_v17 }
 0x287   :  { %735 = vst [vmem:[#allocation13 + $0x30] sm:$0xff] %v688_v32 }
 0x288   :  { %736 = vst [vmem:[#allocation13 + $0x38] sm:$0xff] %v717_v33 }
 0x28c   :  { %v690_v34 = vpop.f32.mrf.mxu0  ;;  %v719_v35 = vpop.f32.mrf.mxu1 }
 0x28d   :  { %v691_v36 = vadd.f32 %v690_v34, %v587_v16  ;;  %v720_v37 = vadd.f32 %v719_v35, %v588_v17 }
 0x28f   :  { %737 = vst [vmem:[#allocation13 + $0x40] sm:$0xff] %v691_v36 }
 0x290   :  { %738 = vst [vmem:[#allocation13 + $0x48] sm:$0xff] %v720_v37 }
 0x294   :  { %v692_v39 = vpop.f32.mrf.mxu0  ;;  %v721_v40 = vpop.f32.mrf.mxu1 }
 0x295   :  { %v693_v41 = vadd.f32 %v692_v39, %v587_v16  ;;  %v722_v42 = vadd.f32 %v721_v40, %v588_v17 }
 0x297   :  { %739 = vst [vmem:[#allocation13 + $0x50] sm:$0xff] %v693_v41 }
 0x298   :  { %740 = vst [vmem:[#allocation13 + $0x58] sm:$0xff] %v722_v42 }
 0x29c   :  { %v695_v43 = vpop.f32.mrf.mxu0  ;;  %v724_v44 = vpop.f32.mrf.mxu1 }
 0x29d   :  { %v696_v38 = vadd.f32 %v695_v43, %v587_v16  ;;  %v725_v45 = vadd.f32 %v724_v44, %v588_v17 }
 0x29f   :  { %741 = vst [vmem:[#allocation13 + $0x60] sm:$0xff] %v696_v38 }
 0x2a0   :  { %742 = vst [vmem:[#allocation13 + $0x68] sm:$0xff] %v725_v45 }
 0x2a4   :  { %v697_v46 = vpop.f32.mrf.mxu0  ;;  %v726_v47 = vpop.f32.mrf.mxu1 }
 0x2a5   :  { %v698_v48 = vadd.f32 %v697_v46, %v587_v16  ;;  %v727_v49 = vadd.f32 %v726_v47, %v588_v17 }
 0x2a7   :  { %743 = vst [vmem:[#allocation13 + $0x70] sm:$0xff] %v698_v48 }
 0x2a8   :  { %744 = vst [vmem:[#allocation13 + $0x78] sm:$0xff] %v727_v49 }
 0x2a9   :  { %757 = dma.vmem_to_hbm [thread:$0]  %s750_s1, 2048, %s752_s24, [#allocation4], %s1222_s27, %s1222_s27, %s1223_s28  }
 0x2aa   :  { %1215 = dma.done.wait [#allocation4], 2048  }
 0x2ab   :  { %1216 = vsyncadd [#allocation4], 4294965248 }
 0x2ac   :  { %762 = vsyncpa [#allocation3], 1 }
 0x2ad   :  { %763 = vsyncpa [#allocation6], 1 }
 0x2ae   :  { %764 = vsyncpa [#allocation9], 1 }
 0x2af   :  { %765 = vsyncpa [#allocation12], 1 }
 0x2b0   :  { %766 = vsyncpa [#allocation4], 1 }

</bundles_post_ra>
